<compile_context>
chip_gen: v6e
topology: v6e:2x2x1
jax: 0.10.0
libtpu: 0.0.40
codegen_flags: <defaults>
</compile_context>

<pallas_src>
import functools

import jax
import jax.numpy as jnp
from jax.experimental import pallas as pl
from jax.experimental.pallas import tpu as pltpu


def gated_attention_kernel(x_ref, wab_ref, wc_ref, pooled_ref, a_ref, *, no_norm):
    # x_ref:      (Bb, N, L)  f32
    # wab_ref:    (L, 2D)     bf16 (or f32) fused [Wa | Wb]
    # wc_ref:     (1, D)      f32 lane-dense row
    # pooled_ref: (Bb, L)     attention-pooled features
    # a_ref:      (Bb, 1, N)  attention scores (softmaxed or raw, per `no_norm`)
    Bb, N, L = x_ref.shape
    D = wc_ref.shape[1]

    x = x_ref[...]                                    # keep f32 for the pooling path
    # Leading-dim merge: relayout-free whenever N is a multiple of 8 (sublane).
    x2 = x.reshape(Bb * N, L)

    # --- fused gated-attention projection: one (Bb*N, L) @ (L, 2D) MXU pass ---
    z = jnp.dot(x2.astype(wab_ref.dtype), wab_ref[...],
                preferred_element_type=jnp.float32)   # (Bb*N, 2D), f32 accumulation
    za = z[:, :D]
    zb = z[:, D:]

    a = jnp.maximum(za, 0.0)                                   # ReLU branch
    b = pl.reciprocal(1.0 + jnp.exp(-zb), approx=True)         # Sigmoid branch (EUP exp+rcp)
    g = a * b                                                  # gate, (Bb*N, D) f32

    # attention_c: Linear(D -> 1, no bias) as VPU multiply + lane reduction.
    s = jnp.sum(g * wc_ref[...], axis=-1, keepdims=True)       # (Bb*N, 1)
    s = s.reshape(Bb, N, 1)                                    # column layout, no transpose

    # --- softmax over the N instances (sublane reduces), exact normalization ---
    m = jnp.max(s, axis=1, keepdims=True)                      # (Bb, 1, 1)
    e = jnp.exp(s - m)                                         # (Bb, N, 1)
    l = jnp.sum(e, axis=1, keepdims=True)                      # (Bb, 1, 1)
    p = e * (1.0 / l)                                          # rows sum to 1 exactly

    # --- attention pooling on the VPU: out[b, :] = sum_n p[b, n] * x[b, n, :] ---
    pooled_ref[...] = jnp.sum(p * x, axis=1).astype(pooled_ref.dtype)      # (Bb, L)

    # Only the A variant actually returned is written; single lane-dense relayout here.
    a_out = s if no_norm else p                                # (Bb, N, 1)
    a_ref[...] = jnp.swapaxes(a_out, 1, 2).astype(a_ref.dtype)  # (Bb, 1, N)


def _pick_b_blk(B, N, L, x_itemsize=4, vmem_budget_bytes=16 << 20, max_rows=1024):
    """Largest divisor of B whose block fits a conservative VMEM byte budget.

    Prefers batch blocks that are multiples of 8 (sublane-aligned 2-D output blocks,
    dense stores, b_blk*N multiple of 8 for the MXU pass) and caps the MXU M dim.
    """
    def fits(d):
        rows = d * N
        x_bytes = 2 * d * N * L * x_itemsize                       # double-buffered input
        out_bytes = 2 * 4 * (max(d, 8) * L + 8 * max(N, 128))      # padded output buffers
        return rows <= max_rows and (x_bytes + out_bytes) <= vmem_budget_bytes

    divisors = [d for d in range(1, B + 1) if B % d == 0]
    aligned = [d for d in divisors if (d % 8 == 0 or d == B) and fits(d)]
    if aligned:
        return max(aligned)
    # Fall back to the whole batch (full-array blocks are always layout-legal).
    # TODO(synk): for huge B*N*L this should instead tile N with an online softmax.
    return B


def attention_gated_forward(x, w_a, w_b, w_c, no_norm=False, b_blk=None,
                            matmul_dtype=jnp.bfloat16):
    """x: (B, N, L) f32; w_a/w_b: (L, D); w_c: (D, 1). Returns (pooled (B,1,L), A (B,1,N))."""
    B, N, L = x.shape
    D = w_a.shape[1]
    if b_blk is None:
        b_blk = _pick_b_blk(B, N, L, x.dtype.itemsize)
    assert B % b_blk == 0, "b_blk must divide B"
    grid = (B // b_blk,)

    # Fused projection weight (L, 2D): one wide MXU pass instead of two D=128 ones.
    w_ab = jnp.concatenate([w_a, w_b], axis=1).astype(matmul_dtype)
    wc_row = jnp.reshape(w_c, (1, D)).astype(jnp.float32)   # lane-dense row for the VPU

    kernel = functools.partial(gated_attention_kernel, no_norm=no_norm)

    wab_itemsize = jnp.dtype(matmul_dtype).itemsize
    flops = int(2 * B * N * L * (2 * D)        # fused projection matmul
                + 8 * B * N * D                # relu / sigmoid / gate / Wc reduce
                + 3 * B * N * L                # pooling multiply + reduce
                + 6 * B * N)                   # softmax
    transcendentals = int(2 * B * N * D + B * N)   # sigmoid exp+rcp, softmax exp
    bytes_accessed = int(x.dtype.itemsize * B * N * L
                         + wab_itemsize * L * 2 * D + 4 * D
                         + 4 * B * L + 4 * B * N)

    pooled2d, attn = pl.pallas_call(
        kernel,
        out_shape=(
            jax.ShapeDtypeStruct((B, L), x.dtype),        # pooled features (2-D, dense)
            jax.ShapeDtypeStruct((B, 1, N), jnp.float32),  # attention, lane-dense over N
        ),
        grid_spec=pltpu.PrefetchScalarGridSpec(
            num_scalar_prefetch=0,
            grid=grid,
            in_specs=[
                pl.BlockSpec((b_blk, N, L), lambda i: (i, 0, 0)),   # x, b_blk batches/step
                pl.BlockSpec((L, 2 * D), lambda i: (0, 0)),         # fused Wa||Wb (whole)
                pl.BlockSpec((1, D), lambda i: (0, 0)),             # Wc row (whole)
            ],
            out_specs=[
                pl.BlockSpec((b_blk, L), lambda i: (i, 0)),
                pl.BlockSpec((b_blk, 1, N), lambda i: (i, 0, 0)),
            ],
        ),
        compiler_params=pltpu.CompilerParams(
            dimension_semantics=("parallel",),
            vmem_limit_bytes=32 * 1024 * 1024),
        cost_estimate=pl.CostEstimate(
            flops=flops, transcendentals=transcendentals, bytes_accessed=bytes_accessed),
    )(x, w_ab, wc_row)

    return pooled2d.reshape(B, 1, L), attn


def reference_forward(x, w_a, w_b, w_c, no_norm=False):
    # Plain-JAX reference mirroring the PyTorch AttentionGated module.
    a = jnp.maximum(x @ w_a, 0.0)               # (B, N, D)
    b = jax.nn.sigmoid(x @ w_b)                 # (B, N, D)
    A = (a * b) @ w_c                           # (B, N, 1)
    A = jnp.swapaxes(A, -1, -2)                 # (B, 1, N)
    A_ori = A
    A_soft = jax.nn.softmax(A, axis=-1)
    out = A_soft @ x                            # (B, 1, L)
    return (out, A_ori) if no_norm else (out, A_soft)


if __name__ == "__main__":
    # Small shapes consistent with the module (D=128 fixed, K=1; input_dim is a parameter).
    B, N, L, D = 16, 16, 256, 128

    key = jax.random.PRNGKey(0)
    kx, ka, kb, kc = jax.random.split(key, 4)

    x = jax.random.normal(kx, (B, N, L), dtype=jnp.float32)
    lim_l = 1.0 / (L ** 0.5)
    lim_d = 1.0 / (D ** 0.5)
    w_a = jax.random.uniform(ka, (L, D), jnp.float32, -lim_l, lim_l)
    w_b = jax.random.uniform(kb, (L, D), jnp.float32, -lim_l, lim_l)
    w_c = jax.random.uniform(kc, (D, 1), jnp.float32, -lim_d, lim_d)

    ref_pooled, ref_A = reference_forward(x, w_a, w_b, w_c, no_norm=False)

    # Default path: bf16 fused projection, whole batch in one grid step.
    pooled, A = attention_gated_forward(x, w_a, w_b, w_c, no_norm=False)
    jax.block_until_ready((pooled, A))
    assert pooled.shape == (B, 1, L) and A.shape == (B, 1, N)
    # bf16 MXU inputs (f32 accumulation) -> loosened tolerance.
    assert jnp.allclose(A, ref_A, atol=1e-2, rtol=1e-2)
    assert jnp.allclose(pooled, ref_pooled, atol=1e-2, rtol=1e-2)
    # Exact softmax normalization: attention rows sum to 1.
    assert jnp.allclose(jnp.sum(A, axis=-1), 1.0, atol=1e-5)

    # f32-matmul path, no_norm=True, multi-step grid (b_blk=8 -> 2 steps) to exercise
    # the index maps and the sublane-aligned 2-D output blocks.
    ref_pooled2, ref_A_ori = reference_forward(x, w_a, w_b, w_c, no_norm=True)
    pooled2, A_ori = attention_gated_forward(
        x, w_a, w_b, w_c, no_norm=True, b_blk=8, matmul_dtype=jnp.float32)
    jax.block_until_ready((pooled2, A_ori))
    assert jnp.allclose(A_ori, ref_A_ori, atol=2e-3, rtol=2e-3)
    assert jnp.allclose(pooled2, ref_pooled2, atol=2e-3, rtol=2e-3)

    print("KERNEL_OK")
</pallas_src>

<mosaic_0001>
module attributes {stable_mosaic.version = 11 : i64} {
  func.func @gated_attention_kernel(%arg0: i32, %arg1: memref<16x16x256xf32, #tpu.memory_space<vmem>>, %arg2: memref<256x256xbf16, #tpu.memory_space<vmem>>, %arg3: memref<1x128xf32, #tpu.memory_space<vmem>>, %arg4: memref<16x256xf32, #tpu.memory_space<vmem>>, %arg5: memref<16x1x16xf32, #tpu.memory_space<vmem>>) attributes {dimension_semantics = [#tpu.dimension_semantics<parallel>], iteration_bounds = array<i64: 1>, scalar_prefetch = 0 : i64, scratch_operands = 0 : i64, tpu.core_type = #tpu.core_type<tc>, window_params = [{transform_indices = @transform_0, window_bounds = array<i64: 16, 16, 256>}, {pipeline_mode = #tpu.pipeline_mode<synchronous>, transform_indices = @transform_1, window_bounds = array<i64: 256, 256>}, {pipeline_mode = #tpu.pipeline_mode<synchronous>, transform_indices = @transform_2, window_bounds = array<i64: 1, 128>}, {transform_indices = @transform_3, window_bounds = array<i64: 16, 256>}, {transform_indices = @transform_4, window_bounds = array<i64: 16, 1, 16>}]} {
    %c0 = arith.constant 0 : index
    %c0_0 = arith.constant 0 : index
    %c0_1 = arith.constant 0 : index
    %0 = vector.load %arg1[%c0, %c0_0, %c0_1] : memref<16x16x256xf32, #tpu.memory_space<vmem>>, vector<16x16x256xf32>
    %1 = vector.shape_cast %0 : vector<16x16x256xf32> to vector<256x256xf32>
    %2 = arith.truncf %1 : vector<256x256xf32> to vector<256x256xbf16>
    %c0_2 = arith.constant 0 : index
    %c0_3 = arith.constant 0 : index
    %3 = vector.load %arg2[%c0_2, %c0_3] : memref<256x256xbf16, #tpu.memory_space<vmem>>, vector<256x256xbf16>
    %cst = arith.constant dense<0.000000e+00> : vector<256x256xf32>
    %4 = tpu.matmul %2, %3, %cst {dimension_numbers = #tpu.dot_dimension_numbers<[1], [0], [0], [1], [0, 0, 1, 1], [], []>} : vector<256x256xbf16>, vector<256x256xbf16>, vector<256x256xf32> -> vector<256x256xf32>
    %5 = vector.extract_strided_slice %4 {offsets = [0, 0], sizes = [256, 128], strides = [1, 1]} : vector<256x256xf32> to vector<256x128xf32>
    %6 = vector.extract_strided_slice %4 {offsets = [0, 128], sizes = [256, 128], strides = [1, 1]} : vector<256x256xf32> to vector<256x128xf32>
    %cst_4 = arith.constant 0.000000e+00 : f32
    %7 = vector.broadcast %cst_4 : f32 to vector<256x128xf32>
    %8 = arith.maximumf %5, %7 : vector<256x128xf32>
    %cst_5 = arith.constant 0.000000e+00 : f32
    %9 = vector.broadcast %cst_5 : f32 to vector<256x128xf32>
    %10 = arith.subf %9, %6 : vector<256x128xf32>
    %11 = math.exp %10 : vector<256x128xf32>
    %cst_6 = arith.constant 1.000000e+00 : f32
    %12 = vector.broadcast %cst_6 : f32 to vector<256x128xf32>
    %13 = arith.addf %12, %11 : vector<256x128xf32>
    %14 = tpu.reciprocal %13 {approx = true} : vector<256x128xf32> -> vector<256x128xf32>
    %15 = arith.mulf %8, %14 : vector<256x128xf32>
    %c0_7 = arith.constant 0 : index
    %c0_8 = arith.constant 0 : index
    %16 = vector.load %arg3[%c0_7, %c0_8] : memref<1x128xf32, #tpu.memory_space<vmem>>, vector<1x128xf32>
    %17 = vector.broadcast %16 : vector<1x128xf32> to vector<256x128xf32>
    %18 = arith.mulf %15, %17 : vector<256x128xf32>
    %cst_9 = arith.constant dense<0.000000e+00> : vector<256xf32>
    %19 = vector.multi_reduction <add>, %18, %cst_9 [1] : vector<256x128xf32> to vector<256xf32>
    %20 = vector.shape_cast %19 : vector<256xf32> to vector<256x1xf32>
    %21 = vector.shape_cast %20 : vector<256x1xf32> to vector<16x16x1xf32>
    %cst_10 = arith.constant dense<0xFF800000> : vector<16x1xf32>
    %22 = vector.multi_reduction <maximumf>, %21, %cst_10 [1] : vector<16x16x1xf32> to vector<16x1xf32>
    %23 = vector.shape_cast %22 : vector<16x1xf32> to vector<16x1x1xf32>
    %24 = vector.broadcast %23 : vector<16x1x1xf32> to vector<16x16x1xf32>
    %25 = arith.subf %21, %24 : vector<16x16x1xf32>
    %26 = math.exp %25 : vector<16x16x1xf32>
    %cst_11 = arith.constant dense<0.000000e+00> : vector<16x1xf32>
    %27 = vector.multi_reduction <add>, %26, %cst_11 [1] : vector<16x16x1xf32> to vector<16x1xf32>
    %28 = vector.shape_cast %27 : vector<16x1xf32> to vector<16x1x1xf32>
    %cst_12 = arith.constant 1.000000e+00 : f32
    %29 = vector.broadcast %cst_12 : f32 to vector<16x1x1xf32>
    %30 = arith.divf %29, %28 : vector<16x1x1xf32>
    %31 = vector.broadcast %30 : vector<16x1x1xf32> to vector<16x16x1xf32>
    %32 = arith.mulf %26, %31 : vector<16x16x1xf32>
    %33 = vector.broadcast %32 : vector<16x16x1xf32> to vector<16x16x256xf32>
    %34 = arith.mulf %33, %0 : vector<16x16x256xf32>
    %cst_13 = arith.constant dense<0.000000e+00> : vector<16x256xf32>
    %35 = vector.multi_reduction <add>, %34, %cst_13 [1] : vector<16x16x256xf32> to vector<16x256xf32>
    %c0_14 = arith.constant 0 : index
    %c0_15 = arith.constant 0 : index
    %36 = vector.load %arg4[%c0_14, %c0_15] : memref<16x256xf32, #tpu.memory_space<vmem>>, vector<16x256xf32>
    tpu.vector_store %arg4[%c0_14, %c0_15], %35 {strides = array<i32>} : memref<16x256xf32, #tpu.memory_space<vmem>>, vector<16x256xf32>,
    %37 = tpu.transpose %32, [0, 2, 1] : vector<16x16x1xf32> -> vector<16x1x16xf32>
    %c0_16 = arith.constant 0 : index
    %c0_17 = arith.constant 0 : index
    %c0_18 = arith.constant 0 : index
    %38 = vector.load %arg5[%c0_16, %c0_17, %c0_18] : memref<16x1x16xf32, #tpu.memory_space<vmem>>, vector<16x1x16xf32>
    tpu.vector_store %arg5[%c0_16, %c0_17, %c0_18], %37 {strides = array<i32>} : memref<16x1x16xf32, #tpu.memory_space<vmem>>, vector<16x1x16xf32>,
    return
  }
  func.func @transform_0(%arg0: i32) -> (i32, i32, i32) {
    %c0_i32 = arith.constant 0 : i32
    %c0_i32_0 = arith.constant 0 : i32
    %c0_i32_1 = arith.constant 0 : i32
    return %arg0, %c0_i32, %c0_i32_0 : i32, i32, i32
  }
  func.func @transform_1(%arg0: i32) -> (i32, i32) {
    %c0_i32 = arith.constant 0 : i32
    %c0_i32_0 = arith.constant 0 : i32
    %c0_i32_1 = arith.constant 0 : i32
    return %c0_i32, %c0_i32_0 : i32, i32
  }
  func.func @transform_2(%arg0: i32) -> (i32, i32) {
    %c0_i32 = arith.constant 0 : i32
    %c0_i32_0 = arith.constant 0 : i32
    %c0_i32_1 = arith.constant 0 : i32
    return %c0_i32, %c0_i32_0 : i32, i32
  }
  func.func @transform_3(%arg0: i32) -> (i32, i32) {
    %c0_i32 = arith.constant 0 : i32
    %c0_i32_0 = arith.constant 0 : i32
    return %arg0, %c0_i32 : i32, i32
  }
  func.func @transform_4(%arg0: i32) -> (i32, i32, i32) {
    %c0_i32 = arith.constant 0 : i32
    %c0_i32_0 = arith.constant 0 : i32
    %c0_i32_1 = arith.constant 0 : i32
    return %arg0, %c0_i32, %c0_i32_0 : i32, i32, i32
  }
}

</mosaic_0001>

<bundles_post_ra>
// kernel: tpu_custom_call.1
= control target key start
LH: loop header
LB: loop body
LE: loop exit
PB: predicated region body
PF: predicated region fallthrough
CT: control target
= control target key end

     0   :  { %10 = vsyncpa [#allocation3], 0  ;;  %s3238_s0 = inlined_call_operand.hbm [shape: f32[16,16,256], index: 0, kind: input, shape index: {}]   ;;  %s3239_s1 = inlined_call_operand.hbm [shape: bf16[256,256], index: 1, kind: input, shape index: {}]   ;;  %s3240_s2 = inlined_call_operand.vmem [shape: f32[1,128], index: 2, kind: input, shape index: {}]   ;;  %s3241_s3 = inlined_call_operand.hbm [shape: f32[16,256], index: 3, kind: output, shape index: {0}]   ;;  %s3242_s4 = inlined_call_operand.hbm [shape: f32[16,1,16], index: 4, kind: output, shape index: {1}]  }
   0x1   :  { %11 = vsyncpa [#allocation6], 0 }
   0x2   :  { %12 = vsyncpa [#allocation4], 0 }
   0x3   :  { %13 = vsyncpa [#allocation9], 0  ;;  %s2663_s15 = smov [#allocation2]  }
   0x4   :  { %s19_s16 = sshll.u32 %s2663_s15, 4  ;;  %s20_s16 = int_to_ptr.vmem [resolvable:$true] %s19_s16 }
   0x5   :  { %s2583_s17 = scalar_lea.vmem %s20_s16, 8192  ;;  %p2588_p1 = scmp.lt.s32.totalorder %s20_s16, %s20_s16 }
   0x6   :  { %p2584_p0 = scmp.ne.s32.totalorder %s20_s16, %s2583_s17  ;;  %p2589_p2 = scmp.lt.s32.totalorder %s2583_s17, %s2583_s17 }
   0x8   :  { %p2590_p3 = por %p2589_p2, %p2588_p1 }
   0xa   :  { %p2591_p4 = pnand %p2590_p3, %p2584_p0 }
   0xc   :  { %2594 = shalt.err (!%p2591_p4)
}
   0xd   :  { %s2664_s18 = smov 256   ;;  %s2665_s19 = smov 16  }
   0xe   :  { %25 = dma.hbm_to_vmem [thread:$0]  %s3238_s0, 8192, %s20_s16, [#allocation3], %s2664_s18, %s2664_s18, %s2665_s19  }
   0xf   :  { %s2666_s22 = smov [#allocation5]  }
  0x10   :  { %s31_s23 = sshll.u32 %s2666_s22, 4  ;;  %s32_s23 = int_to_ptr.vmem [resolvable:$true] %s31_s23 }
  0x11   :  { %s2603_s24 = scalar_lea.vmem %s32_s23, 4096  ;;  %p2608_p6 = scmp.lt.s32.totalorder %s32_s23, %s32_s23 }
  0x12   :  { %p2604_p5 = scmp.ne.s32.totalorder %s32_s23, %s2603_s24  ;;  %p2609_p7 = scmp.lt.s32.totalorder %s2603_s24, %s2603_s24 }
  0x14   :  { %p2610_p8 = por %p2609_p7, %p2608_p6 }
  0x16   :  { %p2611_p9 = pnand %p2610_p8, %p2604_p5 }
  0x18   :  { %2614 = shalt.err (!%p2611_p9)
}
  0x19   :  { %s2667_s25 = smov 128   ;;  %s2668_s26 = smov 8  }
  0x1a   :  { %37 = dma.hbm_to_vmem [thread:$0]  %s3239_s1, 4096, %s32_s23, [#allocation6], %s2667_s25, %s2667_s25, %s2668_s26  }
  0x1b   :  { %2655 = dma.done.wait [#allocation3], 8192  }
  0x1c   :  { %2656 = vsyncadd [#allocation3], 4294959104 }
  0x1d   :  { %2657 = dma.done.wait [#allocation6], 4096  }
  0x1e   :  { %2658 = vsyncadd [#allocation6], 4294963200  ;;  %v2239_v0 = vld [vmem:[#allocation5 + $0x74] ss:$8 sps:$4 sm:$0xff]   ;;  %v2241_v1 = vld [vmem:[#allocation5 + $0x70] ss:$8 sps:$4 sm:$0xff]  }
  0x1f   :  { %334 = vmatprep.subr.bf16.mxu0 %v2239_v0  ;;  %2197 = vmatprep.subr.bf16.mxu1 %v2239_v0  ;;  %v2242_v2 = vld [vmem:[#allocation5 + $0x64] ss:$8 sps:$4 sm:$0xff]   ;;  %v2244_v3 = vld [vmem:[#allocation5 + $0x60] ss:$8 sps:$4 sm:$0xff]   ;;  %v2245_v4 = vld [vmem:[#allocation5 + $0x54] ss:$8 sps:$4 sm:$0xff]  }
  0x20   :  { %335 = vmatpush1.bf16.msra.mxu0 %v2241_v1  ;;  %2213 = vmatpush1.bf16.msra.mxu1 %v2241_v1  ;;  %v2247_v5 = vld [vmem:[#allocation5 + $0x50] ss:$8 sps:$4 sm:$0xff]   ;;  %v2248_v6 = vld [vmem:[#allocation5 + $0x44] ss:$8 sps:$4 sm:$0xff]   ;;  %v2250_v7 = vld [vmem:[#allocation5 + $0x40] ss:$8 sps:$4 sm:$0xff]  }
  0x21   :  { %336 = vmatprep.subr.bf16.mxu0 %v2242_v2  ;;  %2198 = vmatprep.subr.bf16.mxu1 %v2242_v2  ;;  %v2251_v8 = vld [vmem:[#allocation5 + $0x34] ss:$8 sps:$4 sm:$0xff]   ;;  %v2253_v9 = vld [vmem:[#allocation5 + $0x30] ss:$8 sps:$4 sm:$0xff]   ;;  %v2254_v10 = vld [vmem:[#allocation5 + $0x24] ss:$8 sps:$4 sm:$0xff]  }
  0x22   :  { %v2256_v11 = vld [vmem:[#allocation5 + $0x20] ss:$8 sps:$4 sm:$0xff]   ;;  %v2257_v12 = vld [vmem:[#allocation5 + $0x14] ss:$8 sps:$4 sm:$0xff]   ;;  %v2259_v18 = vld [vmem:[#allocation5 + $0x10] ss:$8 sps:$4 sm:$0xff]  }
  0x23   :  { %v47_v13 = vld [vmem:[#allocation2 + $0x8] sm:$0xff]  ;;  %v49_v14 = vld [vmem:[#allocation2 + $0x18] sm:$0xff]  ;;  %v46_v38 = vld [vmem:[#allocation2] sm:$0xff]  ;;  %vm1558_vm0 = vcmask 1041409   ;;  %vm1560_vm1 = vcmask 1042434   ;;  %vm1562_vm2 = vcmask 1043459  }
  0x24   :  { %337 = vmatpush1.bf16.msra.mxu0 %v2244_v3  ;;  %2214 = vmatpush1.bf16.msra.mxu1 %v2244_v3  ;;  %v111_v15 = vpack.c.bf16 %v49_v14, %v47_v13  ;;  %v79_v16 = vld [vmem:[#allocation2 + $0x108] sm:$0xff]  ;;  %v81_v17 = vld [vmem:[#allocation2 + $0x118] sm:$0xff]  ;;  %v48_v39 = vld [vmem:[#allocation2 + $0x10] sm:$0xff]  ;;  %vm1564_vm3 = vcmask 1044484   ;;  %vm1566_vm4 = vcmask 1045509   ;;  %vm1568_vm5 = vcmask 1046534  }
  0x25   :  { %338 = vmatprep.subr.bf16.mxu0 %v2245_v4  ;;  %2199 = vmatprep.subr.bf16.mxu1 %v2245_v4  ;;  %v127_v19 = vpack.c.bf16 %v81_v17, %v79_v16  ;;  %v2260_v20 = vld [vmem:[#allocation5 + $0x4] ss:$8 sps:$4 sm:$0xff]   ;;  %v2262_v21 = vld [vmem:[#allocation5] ss:$8 sps:$4 sm:$0xff]   ;;  %v2263_v22 = vld [vmem:[#allocation5 + $0xf4] ss:$8 sps:$4 sm:$0xff]   ;;  %v110_v46 = vpack.c.bf16 %v48_v39, %v46_v38 }
  0x26   :  { %366 = vmatprep.mubr.bf16.mxu0 %v111_v15  ;;  %v2265_v23 = vld [vmem:[#allocation5 + $0xf0] ss:$8 sps:$4 sm:$0xff]   ;;  %v2266_v24 = vld [vmem:[#allocation5 + $0xe4] ss:$8 sps:$4 sm:$0xff]   ;;  %v2268_v25 = vld [vmem:[#allocation5 + $0xe0] ss:$8 sps:$4 sm:$0xff]  }
  0x27   :  { %446 = vmatprep.mubr.bf16.mxu1 %v127_v19  ;;  %v2269_v26 = vld [vmem:[#allocation5 + $0xd4] ss:$8 sps:$4 sm:$0xff]   ;;  %v2271_v27 = vld [vmem:[#allocation5 + $0xd0] ss:$8 sps:$4 sm:$0xff]   ;;  %v2272_v28 = vld [vmem:[#allocation5 + $0xc4] ss:$8 sps:$4 sm:$0xff]  }
  0x28   :  { %339 = vmatpush1.bf16.msra.mxu0 %v2247_v5  ;;  %2215 = vmatpush1.bf16.msra.mxu1 %v2247_v5  ;;  %v2274_v29 = vld [vmem:[#allocation5 + $0xc0] ss:$8 sps:$4 sm:$0xff]   ;;  %v2275_v30 = vld [vmem:[#allocation5 + $0xb4] ss:$8 sps:$4 sm:$0xff]   ;;  %v2277_v31 = vld [vmem:[#allocation5 + $0xb0] ss:$8 sps:$4 sm:$0xff]  }
  0x29   :  { %340 = vmatprep.subr.bf16.mxu0 %v2248_v6  ;;  %2200 = vmatprep.subr.bf16.mxu1 %v2248_v6  ;;  %v2278_v32 = vld [vmem:[#allocation5 + $0xa4] ss:$8 sps:$4 sm:$0xff]   ;;  %v2280_v33 = vld [vmem:[#allocation5 + $0xa0] ss:$8 sps:$4 sm:$0xff]   ;;  %v2281_v34 = vld [vmem:[#allocation5 + $0x94] ss:$8 sps:$4 sm:$0xff]  }
  0x2a   :  { %v2283_v35 = vld [vmem:[#allocation5 + $0x90] ss:$8 sps:$4 sm:$0xff]   ;;  %v2284_v36 = vld [vmem:[#allocation5 + $0x84] ss:$8 sps:$4 sm:$0xff]   ;;  %v2286_v37 = vld [vmem:[#allocation5 + $0x80] ss:$8 sps:$4 sm:$0xff]  }
  0x2b   :  { %v78_v40 = vld [vmem:[#allocation2 + $0x100] sm:$0xff]  ;;  %v80_v41 = vld [vmem:[#allocation2 + $0x110] sm:$0xff]  ;;  %v51_v42 = vld [vmem:[#allocation2 + $0x28] sm:$0xff]  ;;  %vm1570_vm6 = vcmask 1047559  }
  0x2c   :  { %341 = vmatpush1.bf16.msra.mxu0 %v2250_v7  ;;  %2216 = vmatpush1.bf16.msra.mxu1 %v2250_v7  ;;  %v53_v43 = vld [vmem:[#allocation2 + $0x38] sm:$0xff]  ;;  %v83_v44 = vld [vmem:[#allocation2 + $0x128] sm:$0xff]  ;;  %v126_v47 = vpack.c.bf16 %v80_v41, %v78_v40  ;;  %v50_v50 = vld [vmem:[#allocation2 + $0x20] sm:$0xff] }
  0x2d   :  { %342 = vmatprep.subr.bf16.mxu0 %v2251_v8  ;;  %2201 = vmatprep.subr.bf16.mxu1 %v2251_v8  ;;  %v85_v45 = vld [vmem:[#allocation2 + $0x138] sm:$0xff]  ;;  %v113_v48 = vpack.c.bf16 %v53_v43, %v51_v42  ;;  %v52_v51 = vld [vmem:[#allocation2 + $0x30] sm:$0xff]  ;;  %v82_v52 = vld [vmem:[#allocation2 + $0x120] sm:$0xff] }
  0x2e   :  { %v129_v49 = vpack.c.bf16 %v85_v45, %v83_v44  ;;  %v84_v53 = vld [vmem:[#allocation2 + $0x130] sm:$0xff]  ;;  %v55_v54 = vld [vmem:[#allocation2 + $0x48] sm:$0xff]  ;;  %v57_v55 = vld [vmem:[#allocation2 + $0x58] sm:$0xff]  ;;  %v112_v58 = vpack.c.bf16 %v52_v51, %v50_v50 }
  0x2f   :  { %v87_v56 = vld [vmem:[#allocation2 + $0x148] sm:$0xff]  ;;  %v89_v57 = vld [vmem:[#allocation2 + $0x158] sm:$0xff]  ;;  %v128_v59 = vpack.c.bf16 %v84_v53, %v82_v52  ;;  %v115_v60 = vpack.c.bf16 %v57_v55, %v55_v54  ;;  %v54_v62 = vld [vmem:[#allocation2 + $0x40] sm:$0xff] }
  0x30   :  { %343 = vmatpush1.bf16.msra.mxu0 %v2253_v9  ;;  %2217 = vmatpush1.bf16.msra.mxu1 %v2253_v9  ;;  %v131_v61 = vpack.c.bf16 %v89_v57, %v87_v56  ;;  %v56_v63 = vld [vmem:[#allocation2 + $0x50] sm:$0xff]  ;;  %v86_v0 = vld [vmem:[#allocation2 + $0x140] sm:$0xff]  ;;  %v59_v2 = vld [vmem:[#allocation2 + $0x68] sm:$0xff] }
  0x31   :  { %344 = vmatprep.subr.bf16.mxu0 %v2254_v10  ;;  %2202 = vmatprep.subr.bf16.mxu1 %v2254_v10  ;;  %v88_v1 = vld [vmem:[#allocation2 + $0x150] sm:$0xff]  ;;  %v61_v3 = vld [vmem:[#allocation2 + $0x78] sm:$0xff]  ;;  %v91_v4 = vld [vmem:[#allocation2 + $0x168] sm:$0xff]  ;;  %v114_v6 = vpack.c.bf16 %v56_v63, %v54_v62 }
  0x32   :  { %v93_v5 = vld [vmem:[#allocation2 + $0x178] sm:$0xff]  ;;  %v130_v7 = vpack.c.bf16 %v88_v1, %v86_v0  ;;  %v117_v8 = vpack.c.bf16 %v61_v3, %v59_v2  ;;  %v58_v10 = vld [vmem:[#allocation2 + $0x60] sm:$0xff]  ;;  %v92_v13 = vld [vmem:[#allocation2 + $0x170] sm:$0xff] }
  0x33   :  { %v133_v9 = vpack.c.bf16 %v93_v5, %v91_v4  ;;  %v63_v14 = vld [vmem:[#allocation2 + $0x88] sm:$0xff]  ;;  %v65_v15 = vld [vmem:[#allocation2 + $0x98] sm:$0xff] }
  0x34   :  { %345 = vmatpush1.bf16.msra.mxu0 %v2256_v11  ;;  %2218 = vmatpush1.bf16.msra.mxu1 %v2256_v11  ;;  %v60_v11 = vld [vmem:[#allocation2 + $0x70] sm:$0xff]  ;;  %v95_v16 = vld [vmem:[#allocation2 + $0x188] sm:$0xff]  ;;  %v97_v17 = vld [vmem:[#allocation2 + $0x198] sm:$0xff] }
  0x35   :  { %346 = vmatprep.subr.bf16.mxu0 %v2257_v12  ;;  %2203 = vmatprep.subr.bf16.mxu1 %v2257_v12  ;;  %v90_v12 = vld [vmem:[#allocation2 + $0x160] sm:$0xff]  ;;  %v71_v38 = vld [vmem:[#allocation2 + $0xc8] sm:$0xff]  ;;  %v73_v39 = vld [vmem:[#allocation2 + $0xd8] sm:$0xff] }
  0x36   :  { %v132_v19 = vpack.c.bf16 %v92_v13, %v90_v12  ;;  %v103_v40 = vld [vmem:[#allocation2 + $0x1c8] sm:$0xff]  ;;  %v105_v41 = vld [vmem:[#allocation2 + $0x1d8] sm:$0xff]  ;;  %v123_v44 = vpack.c.bf16 %v73_v39, %v71_v38 }
  0x37   :  { %v139_v45 = vpack.c.bf16 %v105_v41, %v103_v40  ;;  %v75_v50 = vld [vmem:[#allocation2 + $0xe8] sm:$0xff]  ;;  %v77_v51 = vld [vmem:[#allocation2 + $0xf8] sm:$0xff] }
  0x38   :  { %347 = vmatpush1.bf16.msra.mxu0 %v2259_v18  ;;  %2219 = vmatpush1.bf16.msra.mxu1 %v2259_v18  ;;  %v116_v18 = vpack.c.bf16 %v60_v11, %v58_v10  ;;  %v107_v52 = vld [vmem:[#allocation2 + $0x1e8] sm:$0xff]  ;;  %v109_v53 = vld [vmem:[#allocation2 + $0x1f8] sm:$0xff]  ;;  %v125_v56 = vpack.c.bf16 %v77_v51, %v75_v50 }
  0x39   :  { %348 = vmatprep.subr.bf16.mxu0 %v2260_v20  ;;  %2204 = vmatprep.subr.bf16.mxu1 %v2260_v20  ;;  %v119_v20 = vpack.c.bf16 %v65_v15, %v63_v14  ;;  %v141_v57 = vpack.c.bf16 %v109_v53, %v107_v52 }
  0x3c   :  { %349 = vmatpush1.bf16.msra.mxu0 %v2262_v21  ;;  %2220 = vmatpush1.bf16.msra.mxu1 %v2262_v21  ;;  %v135_v21 = vpack.c.bf16 %v97_v17, %v95_v16 }
  0x3d   :  { %350 = vmatprep.subr.bf16.mxu0 %v2263_v22  ;;  %2205 = vmatprep.subr.bf16.mxu1 %v2263_v22  ;;  %v62_v22 = vld [vmem:[#allocation2 + $0x80] sm:$0xff] }
  0x40   :  { %351 = vmatpush2.bf16.msra.mxu0 %v2265_v23  ;;  %2221 = vmatpush2.bf16.msra.mxu1 %v2265_v23  ;;  %v64_v23 = vld [vmem:[#allocation2 + $0x90] sm:$0xff] }
  0x41   :  { %352 = vmatprep.subr.bf16.mxu0 %v2266_v24  ;;  %2206 = vmatprep.subr.bf16.mxu1 %v2266_v24  ;;  %v94_v24 = vld [vmem:[#allocation2 + $0x180] sm:$0xff] }
  0x44   :  { %353 = vmatpush2.bf16.msra.mxu0 %v2268_v25  ;;  %2222 = vmatpush2.bf16.msra.mxu1 %v2268_v25  ;;  %v96_v25 = vld [vmem:[#allocation2 + $0x190] sm:$0xff] }
  0x45   :  { %354 = vmatprep.subr.bf16.mxu0 %v2269_v26  ;;  %2207 = vmatprep.subr.bf16.mxu1 %v2269_v26  ;;  %v67_v26 = vld [vmem:[#allocation2 + $0xa8] sm:$0xff] }
  0x48   :  { %355 = vmatpush2.bf16.msra.mxu0 %v2271_v27  ;;  %2223 = vmatpush2.bf16.msra.mxu1 %v2271_v27  ;;  %v69_v27 = vld [vmem:[#allocation2 + $0xb8] sm:$0xff] }
  0x49   :  { %356 = vmatprep.subr.bf16.mxu0 %v2272_v28  ;;  %2208 = vmatprep.subr.bf16.mxu1 %v2272_v28  ;;  %v99_v28 = vld [vmem:[#allocation2 + $0x1a8] sm:$0xff] }
  0x4c   :  { %357 = vmatpush2.bf16.msra.mxu0 %v2274_v29  ;;  %2224 = vmatpush2.bf16.msra.mxu1 %v2274_v29  ;;  %v101_v29 = vld [vmem:[#allocation2 + $0x1b8] sm:$0xff] }
  0x4d   :  { %358 = vmatprep.subr.bf16.mxu0 %v2275_v30  ;;  %2209 = vmatprep.subr.bf16.mxu1 %v2275_v30  ;;  %v118_v30 = vpack.c.bf16 %v64_v23, %v62_v22 }
  0x50   :  { %359 = vmatpush2.bf16.msra.mxu0 %v2277_v31  ;;  %2225 = vmatpush2.bf16.msra.mxu1 %v2277_v31  ;;  %v134_v31 = vpack.c.bf16 %v96_v25, %v94_v24 }
  0x51   :  { %360 = vmatprep.subr.bf16.mxu0 %v2278_v32  ;;  %2210 = vmatprep.subr.bf16.mxu1 %v2278_v32  ;;  %v121_v32 = vpack.c.bf16 %v69_v27, %v67_v26 }
  0x54   :  { %361 = vmatpush2.bf16.msra.mxu0 %v2280_v33  ;;  %2226 = vmatpush2.bf16.msra.mxu1 %v2280_v33  ;;  %v137_v33 = vpack.c.bf16 %v101_v29, %v99_v28 }
  0x55   :  { %362 = vmatprep.subr.bf16.mxu0 %v2281_v34  ;;  %2211 = vmatprep.subr.bf16.mxu1 %v2281_v34  ;;  %v66_v34 = vld [vmem:[#allocation2 + $0xa0] sm:$0xff] }
  0x58   :  { %363 = vmatpush2.bf16.msra.mxu0 %v2283_v35  ;;  %2227 = vmatpush2.bf16.msra.mxu1 %v2283_v35  ;;  %v68_v35 = vld [vmem:[#allocation2 + $0xb0] sm:$0xff] }
  0x59   :  { %364 = vmatprep.subr.bf16.mxu0 %v2284_v36  ;;  %2212 = vmatprep.subr.bf16.mxu1 %v2284_v36  ;;  %v98_v36 = vld [vmem:[#allocation2 + $0x1a0] sm:$0xff]  ;;  %v120_v42 = vpack.c.bf16 %v68_v35, %v66_v34 }
  0x5c   :  { %365 = vmatpush2.bf16.msra.mxu0 %v2286_v37  ;;  %2228 = vmatpush2.bf16.msra.mxu1 %v2286_v37  ;;  %v100_v37 = vld [vmem:[#allocation2 + $0x1b0] sm:$0xff] }
  0x5d   :  { %v136_v43 = vpack.c.bf16 %v100_v37, %v98_v36 }
  0x5f   :  { %367 = vmatmul.mubr.bf16.vlgmr.msra.gmra.mxu0 %v110_v46  ;;  %447 = vmatmul.mubr.bf16.vlgmr.msra.gmra.mxu1 %v126_v47  ;;  %v70_v46 = vld [vmem:[#allocation2 + $0xc0] sm:$0xff]  ;;  %v72_v47 = vld [vmem:[#allocation2 + $0xd0] sm:$0xff] }
  0x60   :  { %376 = vmatprep.mubr.bf16.mxu0 %v113_v48  ;;  %456 = vmatprep.mubr.bf16.mxu1 %v129_v49  ;;  %v102_v48 = vld [vmem:[#allocation2 + $0x1c0] sm:$0xff]  ;;  %v104_v49 = vld [vmem:[#allocation2 + $0x1d0] sm:$0xff]  ;;  %v122_v54 = vpack.c.bf16 %v72_v47, %v70_v46 }
  0x61   :  { %v138_v55 = vpack.c.bf16 %v104_v49, %v102_v48 }
  0x67   :  { %377 = vmatmul.mubr.bf16.gmra.mxu0 %v112_v58  ;;  %457 = vmatmul.mubr.bf16.gmra.mxu1 %v128_v59  ;;  %v74_v58 = vld [vmem:[#allocation2 + $0xe0] sm:$0xff]  ;;  %v76_v59 = vld [vmem:[#allocation2 + $0xf0] sm:$0xff] }
  0x68   :  { %386 = vmatprep.mubr.bf16.mxu0 %v115_v60  ;;  %466 = vmatprep.mubr.bf16.mxu1 %v131_v61  ;;  %v106_v60 = vld [vmem:[#allocation2 + $0x1e0] sm:$0xff]  ;;  %v108_v61 = vld [vmem:[#allocation2 + $0x1f0] sm:$0xff]  ;;  %v124_v62 = vpack.c.bf16 %v76_v59, %v74_v58 }
  0x69   :  { %v140_v63 = vpack.c.bf16 %v108_v61, %v106_v60 }
  0x6f   :  { %387 = vmatmul.mubr.bf16.gmra.mxu0 %v114_v6  ;;  %467 = vmatmul.mubr.bf16.gmra.mxu1 %v130_v7 }
  0x70   :  { %396 = vmatprep.mubr.bf16.mxu0 %v117_v8  ;;  %476 = vmatprep.mubr.bf16.mxu1 %v133_v9 }
  0x77   :  { %397 = vmatmul.mubr.bf16.gmra.mxu0 %v116_v18  ;;  %477 = vmatmul.mubr.bf16.gmra.mxu1 %v132_v19 }
  0x78   :  { %406 = vmatprep.mubr.bf16.mxu0 %v119_v20  ;;  %486 = vmatprep.mubr.bf16.mxu1 %v135_v21 }
  0x7f   :  { %407 = vmatmul.mubr.bf16.gmra.mxu0 %v118_v30  ;;  %487 = vmatmul.mubr.bf16.gmra.mxu1 %v134_v31 }
  0x80   :  { %416 = vmatprep.mubr.bf16.mxu0 %v121_v32  ;;  %496 = vmatprep.mubr.bf16.mxu1 %v137_v33 }
  0x87   :  { %417 = vmatmul.mubr.bf16.gmra.mxu0 %v120_v42  ;;  %497 = vmatmul.mubr.bf16.gmra.mxu1 %v136_v43 }
  0x88   :  { %426 = vmatprep.mubr.bf16.mxu0 %v123_v44  ;;  %506 = vmatprep.mubr.bf16.mxu1 %v139_v45 }
  0x8f   :  { %427 = vmatmul.mubr.bf16.gmra.mxu0 %v122_v54  ;;  %507 = vmatmul.mubr.bf16.gmra.mxu1 %v138_v55 }
  0x90   :  { %436 = vmatprep.mubr.bf16.mxu0 %v125_v56  ;;  %516 = vmatprep.mubr.bf16.mxu1 %v141_v57 }
  0x97   :  { %437 = vmatmul.mubr.bf16.gmra.mxu0 %v124_v62  ;;  %517 = vmatmul.mubr.bf16.gmra.mxu1 %v140_v63 }
 0x11f   :  { %v2706_v0 = vpop.f32.mrf.mxu0  ;;  %v2708_v1 = vpop.f32.mrf.mxu1 }
 0x121   :  { %v370_v2 = vpop.f32.mrf.mxu0  ;;  %v450_v3 = vpop.f32.mrf.mxu1 }
 0x122   :  { %v559_v4 = vsub.f32 0.0, %v370_v2  ;;  %v575_v5 = vsub.f32 0.0, %v450_v3 }
 0x123   :  { %v2710_v6 = vpop.f32.mrf.mxu0  ;;  %v2712_v7 = vpop.f32.mrf.mxu1 }
 0x124   :  { %v591_v8 = vmul.f32 1.442695, %v559_v4  ;;  %v623_v9 = vmul.f32 1.442695, %v575_v5 }
 0x125   :  { %v374_v10 = vpop.f32.mrf.mxu0  ;;  %v454_v11 = vpop.f32.mrf.mxu1 }
 0x126   :  { %2287 = vpow2.f32 %v591_v8  ;;  %v560_v12 = vsub.f32 0.0, %v374_v10  ;;  %v576_v13 = vsub.f32 0.0, %v454_v11 }
 0x127   :  { %2289 = vpow2.f32 %v623_v9  ;;  %v2714_v14 = vpop.f32.mrf.mxu0  ;;  %v2716_v15 = vpop.f32.mrf.mxu1 }
 0x128   :  { %v593_v16 = vmul.f32 1.442695, %v560_v12  ;;  %v625_v17 = vmul.f32 1.442695, %v576_v13 }
 0x129   :  { %v380_v18 = vpop.f32.mrf.mxu0  ;;  %v460_v19 = vpop.f32.mrf.mxu1 }
 0x12a   :  { %2291 = vpow2.f32 %v593_v16  ;;  %v561_v20 = vsub.f32 0.0, %v380_v18  ;;  %v577_v21 = vsub.f32 0.0, %v460_v19 }
 0x12b   :  { %2293 = vpow2.f32 %v625_v17  ;;  %v2718_v22 = vpop.f32.mrf.mxu0  ;;  %v2720_v23 = vpop.f32.mrf.mxu1 }
 0x12c   :  { %v595_v24 = vmul.f32 1.442695, %v561_v20  ;;  %v627_v25 = vmul.f32 1.442695, %v577_v21 }
 0x12d   :  { %v384_v26 = vpop.f32.mrf.mxu0  ;;  %v464_v27 = vpop.f32.mrf.mxu1 }
 0x12e   :  { %2295 = vpow2.f32 %v595_v24  ;;  %v562_v28 = vsub.f32 0.0, %v384_v26  ;;  %v578_v29 = vsub.f32 0.0, %v464_v27 }
 0x12f   :  { %2297 = vpow2.f32 %v627_v25  ;;  %v2722_v30 = vpop.f32.mrf.mxu0  ;;  %v2724_v31 = vpop.f32.mrf.mxu1 }
 0x130   :  { %v597_v32 = vmul.f32 1.442695, %v562_v28  ;;  %v629_v33 = vmul.f32 1.442695, %v578_v29 }
 0x131   :  { %v390_v34 = vpop.f32.mrf.mxu0  ;;  %v470_v35 = vpop.f32.mrf.mxu1 }
 0x132   :  { %2299 = vpow2.f32 %v597_v32  ;;  %v563_v36 = vsub.f32 0.0, %v390_v34  ;;  %v579_v37 = vsub.f32 0.0, %v470_v35  ;;  %v543_v34 = vmax.f32 %v2708_v1, 0.0 }
 0x133   :  { %v2288_v38 = vpop.eup %2287  ;;  %2301 = vpow2.f32 %v629_v33  ;;  %v2726_v39 = vpop.f32.mrf.mxu0  ;;  %v527_v33 = vmax.f32 %v2706_v0, 0.0 }
 0x134   :  { %v2728_v40 = vpop.f32.mrf.mxu1  ;;  %v2290_v41 = vpop.eup %2289  ;;  %v655_v42 = vadd.f32 1.0, %v2288_v38  ;;  %v599_v43 = vmul.f32 1.442695, %v563_v36  ;;  %v631_v45 = vmul.f32 1.442695, %v579_v37 }
 0x135   :  { %v671_v44 = vadd.f32 1.0, %v2290_v41  ;;  %v394_v46 = vpop.f32.mrf.mxu0 }
 0x136   :  { %v474_v47 = vpop.f32.mrf.mxu1  ;;  %2303 = vrcp.f32 %v655_v42  ;;  %v564_v48 = vsub.f32 0.0, %v394_v46  ;;  %v2751_v42 = vld [vmem:[%s3240_s2] ss:$0 sm:$0xff]  ;;  %s2669_s2 = smov [#allocation7]  }
 0x137   :  { %v580_v49 = vsub.f32 0.0, %v474_v47  ;;  %v2292_v50 = vpop.eup %2291  ;;  %2305 = vrcp.f32 %v671_v44  ;;  %v2730_v51 = vpop.f32.mrf.mxu0  ;;  %v528_v44 = vmax.f32 %v2710_v6, 0.0  ;;  %s2135_s29 = sshll.u32 %s2669_s2, 4  ;;  %s2136_s29 = int_to_ptr.vmem [resolvable:$true] %s2135_s29 }
 0x138   :  { %v2732_v52 = vpop.f32.mrf.mxu1  ;;  %v2294_v53 = vpop.eup %2293  ;;  %v656_v54 = vadd.f32 1.0, %v2292_v50  ;;  %2307 = vpow2.f32 %v599_v43  ;;  %v601_v55 = vmul.f32 1.442695, %v564_v48  ;;  %s2615_s30 = scalar_lea.vmem %s2136_s29, 512  ;;  %p2620_p11 = scmp.lt.s32.totalorder %s2136_s29, %s2136_s29 }
 0x139   :  { %v672_v56 = vadd.f32 1.0, %v2294_v53  ;;  %2309 = vpow2.f32 %v631_v45  ;;  %v633_v57 = vmul.f32 1.442695, %v580_v49  ;;  %v400_v58 = vpop.f32.mrf.mxu0  ;;  %p2616_p10 = scmp.ne.s32.totalorder %s2136_s29, %s2615_s30  ;;  %p2621_p12 = scmp.lt.s32.totalorder %s2615_s30, %s2615_s30 }
 0x13a   :  { %v480_v59 = vpop.f32.mrf.mxu1  ;;  %2311 = vrcp.f32 %v656_v54  ;;  %v565_v60 = vsub.f32 0.0, %v400_v58  ;;  %v544_v54 = vmax.f32 %v2712_v7, 0.0 }
 0x13b   :  { %v581_v61 = vsub.f32 0.0, %v480_v59  ;;  %v2296_v62 = vpop.eup %2295  ;;  %2313 = vrcp.f32 %v672_v56  ;;  %v2734_v63 = vpop.f32.mrf.mxu0  ;;  %v529_v59 = vmax.f32 %v2714_v14, 0.0  ;;  %p2622_p13 = por %p2621_p12, %p2620_p11 }
 0x13c   :  { %v2736_v2 = vpop.f32.mrf.mxu1  ;;  %v2298_v3 = vpop.eup %2297  ;;  %v657_v4 = vadd.f32 1.0, %v2296_v62  ;;  %2315 = vpow2.f32 %v601_v55  ;;  %v603_v5 = vmul.f32 1.442695, %v565_v60 }
 0x13d   :  { %v673_v8 = vadd.f32 1.0, %v2298_v3  ;;  %2317 = vpow2.f32 %v633_v57  ;;  %v635_v9 = vmul.f32 1.442695, %v581_v61  ;;  %v404_v10 = vpop.f32.mrf.mxu0  ;;  %v545_v3 = vmax.f32 %v2716_v15, 0.0  ;;  %p2623_p0 = pnand %p2622_p13, %p2616_p10 }
 0x13e   :  { %v484_v11 = vpop.f32.mrf.mxu1  ;;  %2319 = vrcp.f32 %v657_v4  ;;  %v566_v12 = vsub.f32 0.0, %v404_v10 }
 0x13f   :  { %v582_v13 = vsub.f32 0.0, %v484_v11  ;;  %v2300_v16 = vpop.eup %2299  ;;  %2321 = vrcp.f32 %v673_v8  ;;  %v2738_v17 = vpop.f32.mrf.mxu0 }
 0x140   :  { %v2740_v18 = vpop.f32.mrf.mxu1  ;;  %v2302_v19 = vpop.eup %2301  ;;  %v658_v20 = vadd.f32 1.0, %v2300_v16  ;;  %2323 = vpow2.f32 %v603_v5  ;;  %v605_v21 = vmul.f32 1.442695, %v566_v12 }
 0x141   :  { %v674_v24 = vadd.f32 1.0, %v2302_v19  ;;  %2325 = vpow2.f32 %v635_v9  ;;  %v637_v25 = vmul.f32 1.442695, %v582_v13  ;;  %v410_v26 = vpop.f32.mrf.mxu0 }
 0x142   :  { %v490_v27 = vpop.f32.mrf.mxu1  ;;  %2327 = vrcp.f32 %v658_v20  ;;  %v567_v28 = vsub.f32 0.0, %v410_v26 }
 0x143   :  { %v583_v29 = vsub.f32 0.0, %v490_v27  ;;  %v2304_v32 = vpop.eup %2303  ;;  %2329 = vrcp.f32 %v674_v24  ;;  %v2744_v35 = vpop.f32.mrf.mxu0  ;;  %v530_v27 = vmax.f32 %v2718_v22, 0.0 }
 0x144   :  { %v2746_v36 = vpop.f32.mrf.mxu1  ;;  %v2306_v37 = vpop.eup %2305  ;;  %2331 = vpow2.f32 %v605_v21  ;;  %v607_v38 = vmul.f32 1.442695, %v567_v28  ;;  %v719_v45 = vmul.f32 %v2304_v32, %v527_v33 }
 0x145   :  { %v639_v41 = vmul.f32 1.442695, %v583_v29  ;;  %v2308_v43 = vpop.eup %2307  ;;  %2333 = vpow2.f32 %v637_v25  ;;  %v414_v0 = vpop.f32.mrf.mxu0  ;;  %v735_v46 = vmul.f32 %v2306_v37, %v543_v34 }
 0x146   :  { %v494_v1 = vpop.f32.mrf.mxu1  ;;  %v2310_v47 = vpop.eup %2309  ;;  %v659_v48 = vadd.f32 1.0, %v2308_v43  ;;  %2335 = vpow2.f32 %v607_v38  ;;  %v568_v49 = vsub.f32 0.0, %v414_v0  ;;  %v758_v6 = vmul.f32 %v2751_v42, %v719_v45 }
 0x147   :  { %v584_v50 = vsub.f32 0.0, %v494_v1  ;;  %v2312_v53 = vpop.eup %2311  ;;  %v675_v55 = vadd.f32 1.0, %v2310_v47  ;;  %2337 = vpow2.f32 %v639_v41  ;;  %v2755_v56 = vpop.f32.mrf.mxu0  ;;  %v774_v8 = vmul.f32 %v2751_v42, %v735_v46 }
 0x148   :  { %v2757_v57 = vpop.f32.mrf.mxu1  ;;  %v2314_v58 = vpop.eup %2313  ;;  %2339 = vrcp.f32 %v659_v48  ;;  %v609_v60 = vmul.f32 1.442695, %v568_v49  ;;  %790 = vadd.xlane.f32.xlu0 %v758_v6  ;;  %v720_v20 = vmul.f32 %v2312_v53, %v528_v44 }
 0x149   :  { %v641_v61 = vmul.f32 1.442695, %v584_v50  ;;  %v2316_v62 = vpop.eup %2315  ;;  %2341 = vrcp.f32 %v675_v55  ;;  %v420_v7 = vpop.f32.mrf.mxu0  ;;  %v736_v5 = vmul.f32 %v2314_v58, %v544_v54  ;;  %v546_v50 = vmax.f32 %v2720_v23, 0.0 }
 0x14a   :  { %v500_v4 = vpop.f32.mrf.mxu1  ;;  %v2318_v9 = vpop.eup %2317  ;;  %v660_v10 = vadd.f32 1.0, %v2316_v62  ;;  %2343 = vpow2.f32 %v609_v60  ;;  %v569_v11 = vsub.f32 0.0, %v420_v7  ;;  %v759_v22 = vmul.f32 %v2751_v42, %v720_v20 }
 0x14b   :  { %v585_v12 = vsub.f32 0.0, %v500_v4  ;;  %v2320_v13 = vpop.eup %2319  ;;  %v676_v14 = vadd.f32 1.0, %v2318_v9  ;;  %2345 = vpow2.f32 %v641_v61  ;;  %v2763_v16 = vpop.f32.mrf.mxu0  ;;  %v775_v15 = vmul.f32 %v2751_v42, %v736_v5 }
 0x14c   :  { %v2765_v19 = vpop.f32.mrf.mxu1  ;;  %v2322_v21 = vpop.eup %2321  ;;  %2347 = vrcp.f32 %v660_v10  ;;  %v611_v24 = vmul.f32 1.442695, %v569_v11  ;;  %822 = vadd.xlane.f32.xlu0 %v774_v8  ;;  %v721_v32 = vmul.f32 %v2320_v13, %v529_v59  ;;  %v531_v9 = vmax.f32 %v2722_v30, 0.0 }
 0x14d   :  { %v643_v25 = vmul.f32 1.442695, %v585_v12  ;;  %v2324_v26 = vpop.eup %2323  ;;  %2349 = vrcp.f32 %v676_v14  ;;  %824 = vadd.xlane.f32.xlu1 %v775_v15  ;;  %v424_v28 = vpop.f32.mrf.mxu0  ;;  %v737_v33 = vmul.f32 %v2322_v21, %v545_v3  ;;  %v547_v13 = vmax.f32 %v2724_v31, 0.0 }
 0x14e   :  { %v504_v29 = vpop.f32.mrf.mxu1  ;;  %v2326_v34 = vpop.eup %2325  ;;  %v661_v37 = vadd.f32 1.0, %v2324_v26  ;;  %2351 = vpow2.f32 %v611_v24  ;;  %v570_v38 = vsub.f32 0.0, %v424_v28  ;;  %v760_v45 = vmul.f32 %v2751_v42, %v721_v32 }
 0x14f   :  { %v586_v41 = vsub.f32 0.0, %v504_v29  ;;  %v2328_v43 = vpop.eup %2327  ;;  %v677_v44 = vadd.f32 1.0, %v2326_v34  ;;  %2353 = vpow2.f32 %v643_v25  ;;  %v2769_v0 = vpop.f32.mrf.mxu0  ;;  %v776_v55 = vmul.f32 %v2751_v42, %v737_v33 }
 0x150   :  { %v2771_v1 = vpop.f32.mrf.mxu1  ;;  %v2330_v46 = vpop.eup %2329  ;;  %2355 = vrcp.f32 %v661_v37  ;;  %v613_v47 = vmul.f32 1.442695, %v570_v38  ;;  %792 = vadd.xlane.f32.xlu0 %v759_v22  ;;  %v722_v6 = vmul.f32 %v2328_v43, %v530_v27 }
 0x151   :  { %v645_v48 = vmul.f32 1.442695, %v586_v41  ;;  %v2332_v49 = vpop.eup %2331  ;;  %2357 = vrcp.f32 %v677_v44  ;;  %794 = vadd.xlane.f32.xlu1 %v760_v45  ;;  %v430_v53 = vpop.f32.mrf.mxu0  ;;  %v738_v5 = vmul.f32 %v2330_v46, %v546_v50  ;;  %v532_v41 = vmax.f32 %v2726_v39, 0.0 }
 0x152   :  { %v510_v54 = vpop.f32.mrf.mxu1  ;;  %v2334_v58 = vpop.eup %2333  ;;  %v662_v59 = vadd.f32 1.0, %v2332_v49  ;;  %2359 = vpow2.f32 %v613_v47  ;;  %v571_v60 = vsub.f32 0.0, %v430_v53  ;;  %v761_v23 = vmul.f32 %v2751_v42, %v722_v6 }
 0x153   :  { %v587_v61 = vsub.f32 0.0, %v510_v54  ;;  %v2336_v62 = vpop.eup %2335  ;;  %v678_v3 = vadd.f32 1.0, %v2334_v58  ;;  %2361 = vpow2.f32 %v645_v48  ;;  %v2777_v7 = vpop.f32.mrf.mxu0  ;;  %v777_v31 = vmul.f32 %v2751_v42, %v738_v5 }
 0x154   :  { %v2779_v4 = vpop.f32.mrf.mxu1  ;;  %v2338_v8 = vpop.eup %2337  ;;  %2363 = vrcp.f32 %v662_v59  ;;  %v663_v10 = vadd.f32 1.0, %v2336_v62  ;;  %v615_v11 = vmul.f32 1.442695, %v571_v60  ;;  %826 = vadd.xlane.f32.xlu0 %v776_v55  ;;  %v548_v53 = vmax.f32 %v2728_v40, 0.0 }
 0x155   :  { %v2340_v12 = vpop.eup %2339  ;;  %2365 = vrcp.f32 %v678_v3  ;;  %v679_v14 = vadd.f32 1.0, %v2338_v8  ;;  %v647_v15 = vmul.f32 1.442695, %v587_v61  ;;  %796 = vadd.xlane.f32.xlu1 %v761_v23  ;;  %v434_v20 = vpop.f32.mrf.mxu0  ;;  %v533_v54 = vmax.f32 %v2730_v51, 0.0 }
 0x156   :  { %v514_v21 = vpop.f32.mrf.mxu1  ;;  %v2342_v24 = vpop.eup %2341  ;;  %2367 = vrcp.f32 %v663_v10  ;;  %v572_v25 = vsub.f32 0.0, %v434_v20  ;;  %v723_v27 = vmul.f32 %v2340_v12, %v531_v9 }
 0x157   :  { %v588_v26 = vsub.f32 0.0, %v514_v21  ;;  %v2344_v28 = vpop.eup %2343  ;;  %2369 = vrcp.f32 %v679_v14  ;;  %v2784_v30 = vpop.f32.mrf.mxu0  ;;  %v739_v37 = vmul.f32 %v2342_v24, %v547_v13  ;;  %v549_v13 = vmax.f32 %v2732_v52, 0.0 }
 0x158   :  { %v2786_v29 = vpop.f32.mrf.mxu1  ;;  %v2346_v32 = vpop.eup %2345  ;;  %v664_v33 = vadd.f32 1.0, %v2344_v28  ;;  %2371 = vpow2.f32 %v615_v11  ;;  %v617_v34 = vmul.f32 1.442695, %v572_v25  ;;  %v762_v47 = vmul.f32 %v2751_v42, %v723_v27 }
 0x159   :  { %v2348_v38 = vpop.eup %2347  ;;  %v680_v43 = vadd.f32 1.0, %v2346_v32  ;;  %2373 = vpow2.f32 %v647_v15  ;;  %v649_v44 = vmul.f32 1.442695, %v588_v26  ;;  %828 = vadd.xlane.f32.xlu1 %v777_v31  ;;  %v440_v22 = vpop.f32.mrf.mxu0  ;;  %v778_v61 = vmul.f32 %v2751_v42, %v739_v37 }
 0x15a   :  { %v520_v45 = vpop.f32.mrf.mxu1  ;;  %v2350_v46 = vpop.eup %2349  ;;  %2375 = vrcp.f32 %v664_v33  ;;  %v573_v48 = vsub.f32 0.0, %v440_v22  ;;  %v724_v6 = vmul.f32 %v2348_v38, %v532_v41  ;;  %798 = vadd.xlane.f32.xlu0 %v762_v47  ;;  %v534_v14 = vmax.f32 %v2734_v63, 0.0 }
 0x15b   :  { %v589_v49 = vsub.f32 0.0, %v520_v45  ;;  %v2352_v50 = vpop.eup %2351  ;;  %2377 = vrcp.f32 %v680_v43  ;;  %v2793_v55 = vpop.f32.mrf.mxu0  ;;  %v740_v51 = vmul.f32 %v2350_v46, %v548_v53  ;;  %v535_v21 = vmax.f32 %v2738_v17, 0.0 }
 0x15c   :  { %v2795_v39 = vpop.f32.mrf.mxu1  ;;  %v2354_v58 = vpop.eup %2353  ;;  %v665_v59 = vadd.f32 1.0, %v2352_v50  ;;  %2379 = vpow2.f32 %v617_v34  ;;  %v619_v60 = vmul.f32 1.442695, %v573_v48  ;;  %v763_v9 = vmul.f32 %v2751_v42, %v724_v6 }
 0x15d   :  { %v2356_v62 = vpop.eup %2355  ;;  %v681_v3 = vadd.f32 1.0, %v2354_v58  ;;  %2381 = vpow2.f32 %v649_v44  ;;  %v651_v23 = vmul.f32 1.442695, %v589_v49  ;;  %v444_v40 = vpop.f32.mrf.mxu0  ;;  %v779_v28 = vmul.f32 %v2751_v42, %v740_v51 }
 0x15e   :  { %v524_v5 = vpop.f32.mrf.mxu1  ;;  %v2358_v8 = vpop.eup %2357  ;;  %2383 = vrcp.f32 %v665_v59  ;;  %v574_v10 = vsub.f32 0.0, %v444_v40  ;;  %v725_v15 = vmul.f32 %v2356_v62, %v533_v54  ;;  %830 = vadd.xlane.f32.xlu0 %v778_v61  ;;  %800 = vadd.xlane.f32.xlu1 %v763_v9  ;;  %v550_v17 = vmax.f32 %v2736_v2, 0.0 }
 0x15f   :  { %v590_v11 = vsub.f32 0.0, %v524_v5  ;;  %v2360_v12 = vpop.eup %2359  ;;  %2385 = vrcp.f32 %v681_v3  ;;  %v741_v32 = vmul.f32 %v2358_v8, %v549_v13  ;;  %v536_v44 = vmax.f32 %v2744_v35, 0.0 }
 0x160   :  { %v2362_v20 = vpop.eup %2361  ;;  %v666_v24 = vadd.f32 1.0, %v2360_v12  ;;  %2387 = vpow2.f32 %v619_v60  ;;  %v621_v25 = vmul.f32 1.442695, %v574_v10  ;;  %v764_v31 = vmul.f32 %v2751_v42, %v725_v15 }
 0x161   :  { %v2364_v26 = vpop.eup %2363  ;;  %2389 = vpow2.f32 %v651_v23  ;;  %v653_v27 = vmul.f32 1.442695, %v590_v11  ;;  %v682_v63 = vadd.f32 1.0, %v2362_v20  ;;  %v780_v46 = vmul.f32 %v2751_v42, %v741_v32 }
 0x162   :  { %v2366_v52 = vpop.eup %2365  ;;  %2391 = vrcp.f32 %v666_v24  ;;  %v726_v33 = vmul.f32 %v2364_v26, %v534_v14  ;;  %832 = vadd.xlane.f32.xlu1 %v779_v28  ;;  %802 = vadd.xlane.f32.xlu0 %v764_v31  ;;  %v551_v2 = vmax.f32 %v2740_v18, 0.0  ;;  %v537_v35 = vmax.f32 %v2755_v56, 0.0 }
 0x163   :  { %v2368_v34 = vpop.eup %2367  ;;  %2393 = vpow2.f32 %v621_v25  ;;  %v742_v47 = vmul.f32 %v2366_v52, %v550_v17  ;;  %v552_v18 = vmax.f32 %v2746_v36, 0.0  ;;  %v538_v56 = vmax.f32 %v2763_v16, 0.0 }
 0x164   :  { %v2370_v37 = vpop.eup %2369  ;;  %v765_v38 = vmul.f32 %v2751_v42, %v726_v33  ;;  %v727_v41 = vmul.f32 %v2368_v34, %v535_v21  ;;  %2395 = vpow2.f32 %v653_v27  ;;  %v553_v14 = vmax.f32 %v2757_v57, 0.0 }
 0x165   :  { %v2372_v43 = vpop.eup %2371  ;;  %2397 = vrcp.f32 %v682_v63  ;;  %v781_v60 = vmul.f32 %v2751_v42, %v742_v47  ;;  %v743_v61 = vmul.f32 %v2370_v37, %v551_v2  ;;  %v554_v28 = vmax.f32 %v2765_v19, 0.0 }
 0x166   :  { %v2374_v22 = vpop.eup %2373  ;;  %v667_v45 = vadd.f32 1.0, %v2372_v43  ;;  %834 = vadd.xlane.f32.xlu0 %v780_v46  ;;  %804 = vadd.xlane.f32.xlu1 %v765_v38  ;;  %v766_v53 = vmul.f32 %v2751_v42, %v727_v41  ;;  %v539_v31 = vmax.f32 %v2769_v0, 0.0  ;;  %v555_v37 = vmax.f32 %v2771_v1, 0.0 }
 0x167   :  { %v2376_v48 = vpop.eup %2375  ;;  %v683_v49 = vadd.f32 1.0, %v2374_v22  ;;  %v782_v10 = vmul.f32 %v2751_v42, %v743_v61  ;;  %v540_v17 = vmax.f32 %v2777_v7, 0.0  ;;  %v556_v22 = vmax.f32 %v2779_v4, 0.0 }
 0x168   :  { %v2378_v50 = vpop.eup %2377  ;;  %2399 = vrcp.f32 %v667_v45  ;;  %v728_v54 = vmul.f32 %v2376_v48, %v536_v44  ;;  %v541_v45 = vmax.f32 %v2784_v30, 0.0  ;;  %v542_v2 = vmax.f32 %v2793_v55, 0.0 }
 0x169   :  { %v2380_v6 = vpop.eup %2379  ;;  %2401 = vrcp.f32 %v683_v49  ;;  %v744_v11 = vmul.f32 %v2378_v50, %v552_v18  ;;  %v557_v50 = vmax.f32 %v2786_v29, 0.0 }
 0x16a   :  { %v2382_v58 = vpop.eup %2381  ;;  %v668_v59 = vadd.f32 1.0, %v2380_v6  ;;  %836 = vadd.xlane.f32.xlu1 %v781_v60  ;;  %806 = vadd.xlane.f32.xlu0 %v766_v53  ;;  %v767_v40 = vmul.f32 %v2751_v42, %v728_v54 }
 0x16b   :  { %v2384_v62 = vpop.eup %2383  ;;  %v684_v3 = vadd.f32 1.0, %v2382_v58  ;;  %v783_v24 = vmul.f32 %v2751_v42, %v744_v11  ;;  %v558_v58 = vmax.f32 %v2795_v39, 0.0 }
 0x16c   :  { %v2386_v23 = vpop.eup %2385  ;;  %2403 = vrcp.f32 %v668_v59  ;;  %v729_v5 = vmul.f32 %v2384_v62, %v537_v35 }
 0x16d   :  { %v2388_v51 = vpop.eup %2387  ;;  %2405 = vrcp.f32 %v684_v3  ;;  %v745_v25 = vmul.f32 %v2386_v23, %v553_v14 }
 0x16e   :  { %v2390_v8 = vpop.eup %2389  ;;  %v669_v9 = vadd.f32 1.0, %v2388_v51  ;;  %838 = vadd.xlane.f32.xlu0 %v782_v10  ;;  %808 = vadd.xlane.f32.xlu1 %v767_v40  ;;  %v768_v36 = vmul.f32 %v2751_v42, %v729_v5 }
 0x16f   :  { %v2392_v12 = vpop.eup %2391  ;;  %v685_v13 = vadd.f32 1.0, %v2390_v8  ;;  %v784_v63 = vmul.f32 %v2751_v42, %v745_v25 }
 0x170   :  { %2407 = vrcp.f32 %v669_v9  ;;  %v730_v15 = vmul.f32 %v2392_v12, %v538_v56  ;;  %v2394_v20 = vpop.eup %2393 }
 0x171   :  { %v2396_v21 = vpop.eup %2395  ;;  %2409 = vrcp.f32 %v685_v13  ;;  %v670_v16 = vadd.f32 1.0, %v2394_v20 }
 0x172   :  { %v2398_v26 = vpop.eup %2397  ;;  %v686_v27 = vadd.f32 1.0, %v2396_v21  ;;  %840 = vadd.xlane.f32.xlu1 %v783_v24  ;;  %810 = vadd.xlane.f32.xlu0 %v768_v36  ;;  %v769_v57 = vmul.f32 %v2751_v42, %v730_v15 }
 0x173   :  { %2411 = vrcp.f32 %v670_v16  ;;  %v746_v32 = vmul.f32 %v2398_v26, %v554_v28 }
 0x174   :  { %2413 = vrcp.f32 %v686_v27 }
 0x175   :  { %v2400_v52 = vpop.eup %2399  ;;  %v785_v38 = vmul.f32 %v2751_v42, %v746_v32 }
 0x176   :  { %v731_v33 = vmul.f32 %v2400_v52, %v539_v31  ;;  %v2402_v34 = vpop.eup %2401  ;;  %842 = vadd.xlane.f32.xlu0 %v784_v63  ;;  %812 = vadd.xlane.f32.xlu1 %v769_v57 }
 0x177   :  { %v747_v41 = vmul.f32 %v2402_v34, %v555_v37 }
 0x178   :  { %v770_v19 = vmul.f32 %v2751_v42, %v731_v33 }
 0x179   :  { %v2404_v0 = vpop.eup %2403  ;;  %v786_v7 = vmul.f32 %v2751_v42, %v747_v41 }
 0x17a   :  { %v732_v43 = vmul.f32 %v2404_v0, %v540_v17  ;;  %v2406_v44 = vpop.eup %2405  ;;  %844 = vadd.xlane.f32.xlu1 %v785_v38  ;;  %814 = vadd.xlane.f32.xlu0 %v770_v19 }
 0x17b   :  { %v748_v47 = vmul.f32 %v2406_v44, %v556_v22 }
 0x17c   :  { %v771_v1 = vmul.f32 %v2751_v42, %v732_v43 }
 0x17d   :  { %v2408_v46 = vpop.eup %2407  ;;  %v787_v30 = vmul.f32 %v2751_v42, %v748_v47 }
 0x17e   :  { %v733_v48 = vmul.f32 %v2408_v46, %v541_v45  ;;  %v2410_v49 = vpop.eup %2409  ;;  %846 = vadd.xlane.f32.xlu0 %v786_v7  ;;  %816 = vadd.xlane.f32.xlu1 %v771_v1 }
 0x17f   :  { %v749_v54 = vmul.f32 %v2410_v49, %v557_v50 }
 0x180   :  { %v772_v4 = vmul.f32 %v2751_v42, %v733_v48  ;;  %v2412_v53 = vpop.eup %2411 }
 0x181   :  { %v734_v6 = vmul.f32 %v2412_v53, %v542_v2  ;;  %v2414_v35 = vpop.eup %2413  ;;  %v788_v29 = vmul.f32 %v2751_v42, %v749_v54 }
 0x182   :  { %848 = vadd.xlane.f32.xlu1 %v787_v30  ;;  %818 = vadd.xlane.f32.xlu0 %v772_v4  ;;  %v750_v60 = vmul.f32 %v2414_v35, %v558_v58 }
 0x183   :  { %v773_v59 = vmul.f32 %v2751_v42, %v734_v6 }
 0x184   :  { %v789_v55 = vmul.f32 %v2751_v42, %v750_v60 }
 0x186   :  { %850 = vadd.xlane.f32.xlu0 %v788_v29  ;;  %820 = vadd.xlane.f32.xlu1 %v773_v59 }
 0x18a   :  { %852 = vadd.xlane.f32.xlu1 %v789_v55 }
 0x1d1   :  { %v791_v61 = vpop.xlane.xlu0 %790 }
 0x1d5   :  { %v823_v3 = vpop.xlane.xlu0 %822 }
 0x1d6   :  { %v825_v62 = vpop.xlane.xlu1 %824 }
 0x1d7   :  { %v910_v23 = vmax.f32 %v823_v3, %v825_v62 }
 0x1d9   :  { %v911_v18 = vrot.slane %v910_v23, 4  ;;  %v793_v40 = vpop.xlane.xlu0 %792 }
 0x1da   :  { %v795_v5 = vpop.xlane.xlu1 %794  ;;  %v854_v51 = vmax.f32 %v791_v61, %v793_v40 }
 0x1db   :  { %v912_v39 = vmax.f32 %v910_v23, %v911_v18 }
 0x1dc   :  { %v855_v8 = vrot.slane %v854_v51, 4 }
 0x1dd   :  { %v913_v56 = vrot.slane %v912_v39, 2  ;;  %v827_v12 = vpop.xlane.xlu0 %826 }
 0x1de   :  { %v797_v9 = vpop.xlane.xlu1 %796  ;;  %v856_v11 = vmax.f32 %v854_v51, %v855_v8 }
 0x1df   :  { %v914_v10 = vmax.f32 %v912_v39, %v913_v56  ;;  %v861_v13 = vmax.f32 %v795_v5, %v797_v9 }
 0x1e0   :  { %v857_v36 = vrot.slane %v856_v11, 2 }
 0x1e1   :  { %v915_v14 = vrot.slane %v914_v10, 1  ;;  %v862_v42 = vrot.slane %v861_v13, 4 }
 0x1e2   :  { %v829_v15 = vpop.xlane.xlu1 %828  ;;  %v858_v21 = vmax.f32 %v856_v11, %v857_v36 }
 0x1e3   :  { %v916_v20 = vmax.f32 %v914_v10, %v915_v14  ;;  %v863_v16 = vmax.f32 %v861_v13, %v862_v42  ;;  %v917_v24 = vmax.f32 %v827_v12, %v829_v15  ;;  %v2839_v31 = vpop.xlane.xlu0 %798 }
 0x1e4   :  { %v859_v27 = vrot.slane %v858_v21, 1 }
 0x1e5   :  { %v982_v25 = vsub.f32 %v823_v3, %v916_v20  ;;  %v983_v26 = vsub.f32 %v825_v62, %v916_v20  ;;  %v864_v28 = vrot.slane %v863_v16, 2  ;;  %v918_v57 = vrot.slane %v917_v24, 4 }
 0x1e6   :  { %v860_v32 = vmax.f32 %v858_v21, %v859_v27 }
 0x1e7   :  { %v1030_v52 = vmul.f32 1.442695, %v982_v25  ;;  %v1032_v63 = vmul.f32 1.442695, %v983_v26  ;;  %v865_v33 = vmax.f32 %v863_v16, %v864_v28  ;;  %v919_v34 = vmax.f32 %v917_v24, %v918_v57  ;;  %v2841_v0 = vpop.xlane.xlu0 %830  ;;  %v2843_v38 = vpop.xlane.xlu1 %800 }
 0x1e8   :  { %v966_v37 = vsub.f32 %v791_v61, %v860_v32  ;;  %v967_v17 = vsub.f32 %v793_v40, %v860_v32  ;;  %v868_v43 = vmax.f32 %v2839_v31, %v2843_v38 }
 0x1e9   :  { %v866_v19 = vrot.slane %v865_v33, 1  ;;  %2415 = vpow2.f32 %v1030_v52  ;;  %v920_v41 = vrot.slane %v919_v34, 2 }
 0x1ea   :  { %2417 = vpow2.f32 %v1032_v63  ;;  %v998_v44 = vmul.f32 1.442695, %v966_v37  ;;  %v1000_v22 = vmul.f32 1.442695, %v967_v17  ;;  %v869_v46 = vrot.slane %v868_v43, 4 }
 0x1eb   :  { %v867_v45 = vmax.f32 %v865_v33, %v866_v19  ;;  %v921_v1 = vmax.f32 %v919_v34, %v920_v41  ;;  %v2847_v48 = vpop.xlane.xlu1 %832  ;;  %v2849_v49 = vpop.xlane.xlu0 %802 }
 0x1ec   :  { %2419 = vpow2.f32 %v998_v44  ;;  %v870_v2 = vmax.f32 %v868_v43, %v869_v46  ;;  %v924_v4 = vmax.f32 %v2841_v0, %v2847_v48 }
 0x1ed   :  { %v968_v7 = vsub.f32 %v795_v5, %v867_v45  ;;  %v969_v47 = vsub.f32 %v797_v9, %v867_v45  ;;  %2421 = vpow2.f32 %v1000_v22  ;;  %v922_v50 = vrot.slane %v921_v1, 1 }
 0x1ee   :  { %v871_v6 = vrot.slane %v870_v2, 2  ;;  %v925_v35 = vrot.slane %v924_v4, 4 }
 0x1ef   :  { %v1002_v53 = vmul.f32 1.442695, %v968_v7  ;;  %v1004_v30 = vmul.f32 1.442695, %v969_v47  ;;  %v923_v54 = vmax.f32 %v921_v1, %v922_v50  ;;  %v2853_v58 = vpop.xlane.xlu0 %834  ;;  %v2855_v59 = vpop.xlane.xlu1 %804 }
 0x1f0   :  { %v872_v55 = vmax.f32 %v870_v2, %v871_v6  ;;  %v926_v61 = vmax.f32 %v924_v4, %v925_v35  ;;  %v875_v62 = vmax.f32 %v2849_v49, %v2855_v59 }
 0x1f1   :  { %2423 = vpow2.f32 %v1002_v53  ;;  %v984_v29 = vsub.f32 %v827_v12, %v923_v54  ;;  %v985_v60 = vsub.f32 %v829_v15, %v923_v54 }
 0x1f2   :  { %2425 = vpow2.f32 %v1004_v30  ;;  %v873_v3 = vrot.slane %v872_v55, 1  ;;  %v927_v18 = vrot.slane %v926_v61, 2  ;;  %v876_v40 = vrot.slane %v875_v62, 4 }
 0x1f3   :  { %v1034_v23 = vmul.f32 1.442695, %v984_v29  ;;  %v2859_v5 = vpop.xlane.xlu1 %836  ;;  %v2861_v39 = vpop.xlane.xlu0 %806  ;;  %v1036_v51 = vmul.f32 1.442695, %v985_v60 }
 0x1f4   :  { %v874_v56 = vmax.f32 %v872_v55, %v873_v3  ;;  %v931_v8 = vmax.f32 %v2853_v58, %v2859_v5  ;;  %v928_v10 = vmax.f32 %v926_v61, %v927_v18  ;;  %v877_v11 = vmax.f32 %v875_v62, %v876_v40 }
 0x1f5   :  { %2427 = vpow2.f32 %v1034_v23 }
 0x1f6   :  { %v2865_v9 = vpop.eup %2415  ;;  %v932_v13 = vrot.slane %v931_v8, 4  ;;  %v970_v14 = vsub.f32 %v2839_v31, %v874_v56  ;;  %v929_v36 = vrot.slane %v928_v10, 1  ;;  %v878_v42 = vrot.slane %v877_v11, 2 }
 0x1f7   :  { %v2867_v12 = vpop.eup %2417  ;;  %v2870_v15 = vpop.xlane.xlu0 %838  ;;  %2429 = vpow2.f32 %v1036_v51  ;;  %v971_v16 = vsub.f32 %v2843_v38, %v874_v56 }
 0x1f8   :  { %v2872_v20 = vpop.xlane.xlu1 %808  ;;  %v933_v24 = vmax.f32 %v931_v8, %v932_v13  ;;  %v1118_v26 = vadd.f32 %v2867_v12, %v2865_v9  ;;  %v930_v27 = vmax.f32 %v928_v10, %v929_v36  ;;  %v879_v28 = vmax.f32 %v877_v11, %v878_v42 }
 0x1f9   :  { %v2874_v21 = vpop.eup %2419  ;;  %v882_v31 = vmax.f32 %v2861_v39, %v2872_v20  ;;  %v1006_v63 = vmul.f32 1.442695, %v970_v14  ;;  %v1008_v17 = vmul.f32 1.442695, %v971_v16 }
 0x1fa   :  { %v2877_v25 = vpop.eup %2421  ;;  %v934_v52 = vrot.slane %v933_v24, 2  ;;  %v880_v32 = vrot.slane %v879_v28, 1  ;;  %v986_v19 = vsub.f32 %v2841_v0, %v930_v27  ;;  %v1119_v44 = vrot.slane %v1118_v26, 4 }
 0x1fb   :  { %v1062_v57 = vadd.f32 %v2877_v25, %v2874_v21  ;;  %v2887_v34 = vpop.xlane.xlu0 %810  ;;  %v883_v41 = vrot.slane %v882_v31, 4  ;;  %v987_v46 = vsub.f32 %v2847_v48, %v930_v27  ;;  %2431 = vpow2.f32 %v1006_v63 }
 0x1fc   :  { %v2885_v33 = vpop.xlane.xlu1 %840  ;;  %v935_v38 = vmax.f32 %v933_v24, %v934_v52  ;;  %v881_v22 = vmax.f32 %v879_v28, %v880_v32  ;;  %2433 = vpow2.f32 %v1008_v17  ;;  %v1038_v54 = vmul.f32 1.442695, %v986_v19 }
 0x1fd   :  { %v938_v45 = vmax.f32 %v2870_v15, %v2885_v33  ;;  %v1063_v1 = vrot.slane %v1062_v57, 4  ;;  %v884_v47 = vmax.f32 %v882_v31, %v883_v41  ;;  %v1040_v61 = vmul.f32 1.442695, %v987_v46 }
 0x1fe   :  { %v2889_v37 = vpop.eup %2423  ;;  %v936_v7 = vrot.slane %v935_v38, 1  ;;  %v972_v50 = vsub.f32 %v2849_v49, %v881_v22  ;;  %v973_v2 = vsub.f32 %v2855_v59, %v881_v22  ;;  %v2917_v14 = vadd.f32 %v1119_v44, %v1118_v26 }
 0x1ff   :  { %v2892_v43 = vpop.eup %2425  ;;  %v939_v0 = vrot.slane %v938_v45, 4  ;;  %v2899_v4 = vpop.xlane.xlu0 %842  ;;  %v885_v29 = vrot.slane %v884_v47, 2  ;;  %v1064_v55 = vadd.f32 %v1063_v1, %v1062_v57 }
 0x200   :  { %v2901_v53 = vpop.xlane.xlu1 %812  ;;  %v1069_v30 = vadd.f32 %v2892_v43, %v2889_v37  ;;  %v937_v6 = vmax.f32 %v935_v38, %v936_v7  ;;  %v1010_v35 = vmul.f32 1.442695, %v972_v50  ;;  %v1012_v48 = vmul.f32 1.442695, %v973_v2 }
 0x201   :  { %v940_v60 = vmax.f32 %v938_v45, %v939_v0  ;;  %v889_v59 = vmax.f32 %v2887_v34, %v2901_v53  ;;  %v886_v3 = vmax.f32 %v884_v47, %v885_v29  ;;  %v1065_v36 = vrot.slane %v1064_v55, 2 }
 0x202   :  { %v988_v49 = vsub.f32 %v2853_v58, %v937_v6  ;;  %2435 = vpow2.f32 %v1010_v35  ;;  %v989_v62 = vsub.f32 %v2859_v5, %v937_v6  ;;  %v2913_v51 = vpop.eup %2427  ;;  %v1070_v56 = vrot.slane %v1069_v30, 4 }
 0x203   :  { %v941_v23 = vrot.slane %v940_v60, 2  ;;  %v2911_v40 = vpop.xlane.xlu0 %814  ;;  %2437 = vpow2.f32 %v1012_v48  ;;  %v887_v58 = vrot.slane %v886_v3, 1  ;;  %v890_v13 = vrot.slane %v889_v59, 4 }
 0x204   :  { %v2909_v18 = vpop.xlane.xlu1 %844  ;;  %v2915_v8 = vpop.eup %2429  ;;  %v1042_v10 = vmul.f32 1.442695, %v988_v49  ;;  %2439 = vpow2.f32 %v1038_v54  ;;  %v1044_v42 = vmul.f32 1.442695, %v989_v62  ;;  %v1071_v28 = vadd.f32 %v1070_v56, %v1069_v30 }
 0x205   :  { %v942_v11 = vmax.f32 %v940_v60, %v941_v23  ;;  %v945_v5 = vmax.f32 %v2899_v4, %v2909_v18  ;;  %2441 = vpow2.f32 %v1040_v61  ;;  %v888_v16 = vmax.f32 %v886_v3, %v887_v58 }
 0x206   :  { %v891_v31 = vmax.f32 %v889_v59, %v890_v13  ;;  %v1125_v26 = vadd.f32 %v2915_v8, %v2913_v51  ;;  %2443 = vpow2.f32 %v1042_v10  ;;  %v1066_v46 = vadd.f32 %v1065_v36, %v1064_v55 }
 0x207   :  { %v943_v24 = vrot.slane %v942_v11, 1  ;;  %v946_v57 = vrot.slane %v945_v5, 4  ;;  %v974_v63 = vsub.f32 %v2861_v39, %v888_v16  ;;  %v975_v32 = vsub.f32 %v2872_v20, %v888_v16  ;;  %v2929_v17 = vpop.xlane.xlu0 %846 }
 0x208   :  { %v2921_v27 = vpop.xlane.xlu1 %816  ;;  %v892_v38 = vrot.slane %v891_v31, 2  ;;  %2445 = vpow2.f32 %v1044_v42  ;;  %v2933_v7 = vpop.eup %2431  ;;  %v1121_v0 = vrot.slane %v2917_v14, 2  ;;  %v1072_v6 = vrot.slane %v1071_v28, 2 }
 0x209   :  { %v896_v52 = vmax.f32 %v2911_v40, %v2921_v27  ;;  %v944_v19 = vmax.f32 %v942_v11, %v943_v24  ;;  %v947_v41 = vmax.f32 %v945_v5, %v946_v57  ;;  %v1014_v22 = vmul.f32 1.442695, %v974_v63  ;;  %v2937_v2 = vpop.eup %2433 }
 0x20a   :  { %v1016_v45 = vmul.f32 1.442695, %v975_v32  ;;  %v893_v50 = vmax.f32 %v891_v31, %v892_v38  ;;  %v1126_v35 = vrot.slane %v1125_v26, 4  ;;  %v1067_v3 = vrot.slane %v1066_v46, 1 }
 0x20b   :  { %v897_v44 = vrot.slane %v896_v52, 4  ;;  %v990_v47 = vsub.f32 %v2870_v15, %v944_v19  ;;  %v991_v39 = vsub.f32 %v2885_v33, %v944_v19  ;;  %v948_v20 = vrot.slane %v947_v41, 2  ;;  %v2942_v61 = vpop.xlane.xlu0 %818 }
 0x20c   :  { %v2931_v1 = vpop.xlane.xlu1 %848  ;;  %2447 = vpow2.f32 %v1014_v22  ;;  %v894_v60 = vrot.slane %v893_v50, 1  ;;  %v1076_v11 = vadd.f32 %v2937_v2, %v2933_v7  ;;  %v1073_v19 = vadd.f32 %v1072_v6, %v1071_v28 }
 0x20d   :  { %v898_v30 = vmax.f32 %v896_v52, %v897_v44  ;;  %v952_v54 = vmax.f32 %v2929_v17, %v2931_v1  ;;  %v1046_v48 = vmul.f32 1.442695, %v990_v47  ;;  %v1048_v29 = vmul.f32 1.442695, %v991_v39 }
 0x20e   :  { %v949_v55 = vmax.f32 %v947_v41, %v948_v20  ;;  %2449 = vpow2.f32 %v1016_v45  ;;  %v895_v56 = vmax.f32 %v893_v50, %v894_v60  ;;  %v1127_v52 = vadd.f32 %v1126_v35, %v1125_v26 }
 0x20f   :  { %v899_v15 = vrot.slane %v898_v30, 2  ;;  %v2946_v49 = vpop.eup %2435  ;;  %v953_v59 = vrot.slane %v952_v54, 4  ;;  %2451 = vpow2.f32 %v1046_v48  ;;  %v1068_v28 = vadd.f32 %v1067_v3, %v1066_v46 }
 0x210   :  { %v2944_v33 = vpop.xlane.xlu1 %820  ;;  %v2950_v23 = vpop.eup %2437  ;;  %v950_v10 = vrot.slane %v949_v55, 1  ;;  %2453 = vpow2.f32 %v1048_v29  ;;  %v976_v42 = vsub.f32 %v2887_v34, %v895_v56  ;;  %v977_v16 = vsub.f32 %v2901_v53, %v895_v56 }
 0x211   :  { %v903_v62 = vmax.f32 %v2942_v61, %v2944_v33  ;;  %v900_v58 = vmax.f32 %v898_v30, %v899_v15  ;;  %v954_v13 = vmax.f32 %v952_v54, %v953_v59  ;;  %v2954_v5 = vpop.eup %2439  ;;  %v1083_v38 = vadd.f32 %v2950_v23, %v2946_v49  ;;  %v2974_v29 = vpop.xlane.xlu0 %850 }
 0x212   :  { %v951_v24 = vmax.f32 %v949_v55, %v950_v10  ;;  %v2958_v57 = vpop.eup %2441  ;;  %v1018_v41 = vmul.f32 1.442695, %v976_v42  ;;  %v1020_v44 = vmul.f32 1.442695, %v977_v16  ;;  %v1077_v34 = vrot.slane %v1076_v11, 4 }
 0x213   :  { %v904_v36 = vrot.slane %v903_v62, 4  ;;  %v901_v31 = vrot.slane %v900_v58, 1  ;;  %v955_v63 = vrot.slane %v954_v13, 2  ;;  %v2963_v45 = vpop.eup %2443  ;;  %v1132_v54 = vadd.f32 %v2958_v57, %v2954_v5 }
 0x214   :  { %v992_v22 = vsub.f32 %v2899_v4, %v951_v24  ;;  %v993_v53 = vsub.f32 %v2909_v18, %v951_v24  ;;  %2455 = vpow2.f32 %v1018_v41  ;;  %v2966_v20 = vpop.xlane.xlu1 %852  ;;  %v1084_v35 = vrot.slane %v1083_v38, 4 }
 0x215   :  { %v905_v32 = vmax.f32 %v903_v62, %v904_v36  ;;  %v902_v47 = vmax.f32 %v900_v58, %v901_v31  ;;  %v956_v39 = vmax.f32 %v954_v13, %v955_v63  ;;  %v2968_v30 = vpop.eup %2445  ;;  %2457 = vpow2.f32 %v1020_v44 }
 0x216   :  { %v1050_v50 = vmul.f32 1.442695, %v992_v22  ;;  %v1052_v4 = vmul.f32 1.442695, %v993_v53  ;;  %v959_v46 = vmax.f32 %v2974_v29, %v2966_v20  ;;  %v1128_v15 = vrot.slane %v1127_v52, 2 }
 0x217   :  { %v906_v26 = vrot.slane %v905_v32, 2  ;;  %v978_v6 = vsub.f32 %v2911_v40, %v902_v47  ;;  %v979_v18 = vsub.f32 %v2921_v27, %v902_v47  ;;  %v957_v48 = vrot.slane %v956_v39, 1 }
 0x218   :  { %2459 = vpow2.f32 %v1050_v50  ;;  %v1078_v40 = vadd.f32 %v1077_v34, %v1076_v11  ;;  %v1133_v56 = vrot.slane %v1132_v54, 4  ;;  %v1139_v27 = vadd.f32 %v2968_v30, %v2963_v45 }
 0x219   :  { %2461 = vpow2.f32 %v1052_v4  ;;  %v1022_v60 = vmul.f32 1.442695, %v978_v6  ;;  %v907_v55 = vmax.f32 %v905_v32, %v906_v26  ;;  %v1024_v59 = vmul.f32 1.442695, %v979_v18  ;;  %v2978_v3 = vpop.eup %2447 }
 0x21a   :  { %v958_v62 = vmax.f32 %v956_v39, %v957_v48  ;;  %2463 = vrcp.f32 %v1068_v28  ;;  %v960_v10 = vrot.slane %v959_v46, 4  ;;  %v1074_v42 = vrot.slane %v1073_v19, 1 }
 0x21b   :  { %v2982_v58 = vpop.eup %2449  ;;  %2465 = vpow2.f32 %v1022_v60  ;;  %v908_v36 = vrot.slane %v907_v55, 1  ;;  %v1085_v24 = vadd.f32 %v1084_v35, %v1083_v38  ;;  %v1122_v11 = vadd.f32 %v1121_v0, %v2917_v14 }
 0x21c   :  { %v994_v13 = vsub.f32 %v2929_v17, %v958_v62  ;;  %v2985_v16 = vpop.eup %2451  ;;  %2467 = vpow2.f32 %v1024_v59  ;;  %v961_v31 = vmax.f32 %v959_v46, %v960_v10  ;;  %v995_v32 = vsub.f32 %v2931_v1, %v958_v62 }
 0x21d   :  { %v2990_v63 = vpop.eup %2453  ;;  %v1075_v41 = vadd.f32 %v1074_v42, %v1073_v19  ;;  %v1079_v44 = vrot.slane %v1078_v40, 2  ;;  %v1140_v22 = vrot.slane %v1139_v27, 4  ;;  %v1090_v17 = vadd.f32 %v2982_v58, %v2978_v3 }
 0x21e   :  { %v962_v34 = vrot.slane %v961_v31, 2  ;;  %v1054_v53 = vmul.f32 1.442695, %v994_v13  ;;  %v909_v47 = vmax.f32 %v907_v55, %v908_v36  ;;  %v1123_v38 = vrot.slane %v1122_v11, 1 }
 0x21f   :  { %v1129_v39 = vadd.f32 %v1128_v15, %v1127_v52  ;;  %v1134_v50 = vadd.f32 %v1133_v56, %v1132_v54  ;;  %v1086_v26 = vrot.slane %v1085_v24, 2  ;;  %v1146_v14 = vadd.f32 %v2990_v63, %v2985_v16 }
 0x220   :  { %v1056_v0 = vmul.f32 1.442695, %v995_v32  ;;  %v963_v28 = vmax.f32 %v961_v31, %v962_v34  ;;  %2469 = vrcp.f32 %v1075_v41  ;;  %v1124_v1 = vadd.f32 %v1123_v38, %v1122_v11  ;;  %v2512_v38 = vld [vmem:[#allocation2 + $0x8] sm:$0xff] }
 0x221   :  { %v2997_v19 = vpop.eup %2455  ;;  %v1141_v4 = vadd.f32 %v1140_v22, %v1139_v27  ;;  %v1091_v6 = vrot.slane %v1090_v17, 4  ;;  %v1130_v35 = vrot.slane %v1129_v39, 1  ;;  %v1080_v18 = vadd.f32 %v1079_v44, %v1078_v40 }
 0x222   :  { %v2999_v48 = vpop.eup %2457  ;;  %2471 = vpow2.f32 %v1054_v53  ;;  %v980_v52 = vsub.f32 %v2942_v61, %v909_v47  ;;  %v981_v54 = vsub.f32 %v2944_v33, %v909_v47  ;;  %v964_v60 = vrot.slane %v963_v28, 1  ;;  %v2511_v53 = vld [vmem:[#allocation2] sm:$0xff] }
 0x223   :  { %v1097_v46 = vadd.f32 %v2999_v48, %v2997_v19  ;;  %2473 = vrcp.f32 %v1124_v1  ;;  %v1131_v15 = vadd.f32 %v1130_v35, %v1129_v39  ;;  %v1081_v59 = vrot.slane %v1080_v18, 1 }
 0x224   :  { %v1135_v56 = vrot.slane %v1134_v50, 2  ;;  %v1147_v40 = vrot.slane %v1146_v14, 4  ;;  %2475 = vpow2.f32 %v1056_v0  ;;  %v3009_v10 = vadd.f32 %v1091_v6, %v1090_v17  ;;  %v2513_v0 = vld [vmem:[#allocation2 + $0x10] sm:$0xff] }
 0x225   :  { %v3003_v55 = vpop.eup %2459  ;;  %v965_v61 = vmax.f32 %v963_v28, %v964_v60  ;;  %v1082_v13 = vadd.f32 %v1081_v59, %v1080_v18  ;;  %v1026_v33 = vmul.f32 1.442695, %v980_v52  ;;  %2477 = vrcp.f32 %v1131_v15 }
 0x226   :  { %v3007_v62 = vpop.eup %2461  ;;  %v1142_v11 = vrot.slane %v1141_v4, 2  ;;  %v1098_v32 = vrot.slane %v1097_v46, 4  ;;  %v1028_v41 = vmul.f32 1.442695, %v981_v54  ;;  %v1087_v44 = vadd.f32 %v1086_v26, %v1085_v24 }
 0x227   :  { %v2464_v27 = vpop.eup %2463  ;;  %v3017_v34 = vadd.f32 %v1147_v40, %v1146_v14  ;;  %v3021_v17 = vadd.f32 %v3007_v62, %v3003_v55  ;;  %2479 = vrcp.f32 %v1082_v13  ;;  %v1093_v24 = vrot.slane %v3009_v10, 2  ;;  %v2514_v14 = vld [vmem:[#allocation2 + $0x18] sm:$0xff] }
 0x228   :  { %v1206_v36 = vmul.f32 %v2464_v27, %v2874_v21  ;;  %v1207_v42 = vmul.f32 %v2464_v27, %v2877_v25  ;;  %v3013_v31 = vpop.eup %2465  ;;  %v1136_v21 = vadd.f32 %v1135_v56, %v1134_v50  ;;  %v996_v25 = vsub.f32 %v2974_v29, %v965_v61 }
 0x229   :  { %v3015_v22 = vpop.eup %2467  ;;  %2481 = vpow2.f32 %v1026_v33  ;;  %v997_v26 = vsub.f32 %v2966_v20, %v965_v61  ;;  %v3026_v6 = vadd.f32 %v1098_v32, %v1097_v46  ;;  %v1088_v18 = vrot.slane %v1087_v44, 1 }
 0x22a   :  { %v1238_v47 = vmul.f32 %v2511_v53, %v1206_v36  ;;  %1601 = vxpose.xlu0.b32.start [1/2] (short) (narrow) %v1206_v36, 8  ;;  %v1239_v39 = vmul.f32 %v2512_v38, %v1206_v36  ;;  %v1240_v28 = vmul.f32 %v2513_v0, %v1207_v42  ;;  %v1241_v1 = vmul.f32 %v2514_v14, %v1207_v42  ;;  %v2516_v38 = vld [vmem:[#allocation2 + $0x28] sm:$0xff]  ;;  %v2517_v0 = vld [vmem:[#allocation2 + $0x30] sm:$0xff] }
 0x22b   :  { %v1104_v35 = vadd.f32 %v3015_v22, %v3013_v31  ;;  %2483 = vpow2.f32 %v1028_v41  ;;  %v1137_v54 = vrot.slane %v1136_v21, 1  ;;  %v1154_v15 = vrot.slane %v3021_v17, 4 }
 0x22c   :  { %v1302_v50 = vadd.f32 %v1240_v28, %v1238_v47  ;;  %v1309_v52 = vadd.f32 %v1241_v1, %v1239_v39  ;;  %v1058_v59 = vmul.f32 1.442695, %v996_v25  ;;  %v3032_v56 = vadd.f32 %v1142_v11, %v1141_v4  ;;  %v2515_v47 = vld [vmem:[#allocation2 + $0x20] sm:$0xff] }
 0x22d   :  { %v2470_v60 = vpop.eup %2469  ;;  %v1060_v46 = vmul.f32 1.442695, %v997_v26  ;;  %v1105_v36 = vrot.slane %v1104_v35, 4  ;;  %v1089_v32 = vadd.f32 %v1088_v18, %v1087_v44  ;;  %v1138_v11 = vadd.f32 %v1137_v54, %v1136_v21  ;;  %v2518_v26 = vld [vmem:[#allocation2 + $0x38] sm:$0xff]  ;;  %v2520_v21 = vld [vmem:[#allocation2 + $0x108] sm:$0xff] }
 0x22e   :  { %1602 = vxpose.xlu0.b32.end [2/2] (short) (narrow) %v1207_v42, 8  ;;  %v1303_v20 = vrot.slane %v1302_v50, 4  ;;  %v1310_v40 = vrot.slane %v1309_v52, 4  ;;  %v1208_v27 = vmul.f32 %v2470_v60, %v2889_v37  ;;  %v1209_v61 = vmul.f32 %v2470_v60, %v2892_v43 }
 0x22f   :  { %v3036_v13 = vpop.eup %2471  ;;  %2485 = vpow2.f32 %v1058_v59  ;;  %v1144_v1 = vrot.slane %v3032_v56, 1 }
 0x230   :  { %v1304_v42 = vadd.f32 %v1303_v20, %v1302_v50  ;;  %v2474_v41 = vpop.eup %2473  ;;  %v1311_v53 = vadd.f32 %v1310_v40, %v1309_v52  ;;  %v1242_v25 = vmul.f32 %v2515_v47, %v1208_v27  ;;  %v1243_v4 = vmul.f32 %v2516_v38, %v1208_v27  ;;  %1633 = vxpose.xlu1.b32.start [1/2] (short) (narrow) %v1208_v27, 8  ;;  %v2519_v52 = vld [vmem:[#allocation2 + $0x100] sm:$0xff]  ;;  %v2521_v40 = vld [vmem:[#allocation2 + $0x110] sm:$0xff] }
 0x231   :  { %v3039_v39 = vpop.eup %2475  ;;  %v1222_v43 = vmul.f32 %v2474_v41, %v2865_v9  ;;  %v1244_v28 = vmul.f32 %v2517_v0, %v1209_v61  ;;  %2487 = vpow2.f32 %v1060_v46  ;;  %v1245_v14 = vmul.f32 %v2518_v26, %v1209_v61 }
 0x232   :  { %v1305_v37 = vrot.slane %v1304_v42, 2  ;;  %v1223_v44 = vmul.f32 %v2474_v41, %v2867_v12  ;;  %v2478_v50 = vpop.eup %2477  ;;  %v1312_v18 = vrot.slane %v1311_v53, 2  ;;  %2489 = vrcp.f32 %v1089_v32  ;;  %v2522_v41 = vld [vmem:[#allocation2 + $0x118] sm:$0xff] }
 0x233   :  { %v1270_v60 = vmul.f32 %v2519_v52, %v1222_v43  ;;  %v1271_v54 = vmul.f32 %v2520_v21, %v1222_v43  ;;  %1857 = vxpose.xlu0.b32.start [1/2] (short) (narrow) %v1222_v43, 8  ;;  %v3046_v9 = vadd.f32 %v3039_v39, %v3036_v13  ;;  %v1316_v59 = vadd.f32 %v1244_v28, %v1242_v25 }
 0x234   :  { %v1323_v20 = vadd.f32 %v1245_v14, %v1243_v4  ;;  %1634 = vxpose.xlu1.b32.end [2/2] (short) (narrow) %v1209_v61, 8  ;;  %2491 = vrcp.f32 %v1138_v11  ;;  %v3049_v12 = vadd.f32 %v1154_v15, %v3021_v17  ;;  %v1306_v46 = vadd.f32 %v1305_v37, %v1304_v42  ;;  %v2480_v38 = vpop.eup %2479 }
 0x235   :  { %v1272_v27 = vmul.f32 %v2521_v40, %v1223_v44  ;;  %v1273_v47 = vmul.f32 %v2522_v41, %v1223_v44  ;;  %v3051_v0 = vadd.f32 %v1105_v36, %v1104_v35  ;;  %v1317_v32 = vrot.slane %v1316_v59, 4  ;;  %v2525_v40 = vld [vmem:[#allocation2 + $0x130] sm:$0xff] }
 0x236   :  { %v1324_v43 = vrot.slane %v1323_v20, 4  ;;  %v1224_v26 = vmul.f32 %v2478_v50, %v2913_v51  ;;  %v3054_v52 = vpop.eup %2481  ;;  %v1313_v25 = vadd.f32 %v1312_v18, %v1311_v53  ;;  %v3059_v17 = vadd.f32 %v1093_v24, %v3009_v10  ;;  %v2523_v18 = vld [vmem:[#allocation2 + $0x120] sm:$0xff] }
 0x237   :  { %v1414_v61 = vadd.f32 %v1272_v27, %v1270_v60  ;;  %v1421_v4 = vadd.f32 %v1273_v47, %v1271_v54  ;;  %1858 = vxpose.xlu0.b32.end [2/2] (short) (narrow) %v1223_v44, 8  ;;  %v1161_v15 = vrot.slane %v3046_v9, 4  ;;  %v1318_v35 = vadd.f32 %v1317_v32, %v1316_v59  ;;  %v2524_v59 = vld [vmem:[#allocation2 + $0x128] sm:$0xff] }
 0x238   :  { %v1325_v36 = vadd.f32 %v1324_v43, %v1323_v20  ;;  %1889 = vxpose.xlu1.b32.start [1/2] (short) (narrow) %v1224_v26, 8  ;;  %v1145_v42 = vadd.f32 %v1144_v1, %v3032_v56  ;;  %v3063_v51 = vpop.eup %2483  ;;  %v1307_v11 = vrot.slane %v1306_v46, 1  ;;  %v1210_v28 = vmul.f32 %v2480_v38, %v2933_v7  ;;  %v2526_v7 = vld [vmem:[#allocation2 + $0x138] sm:$0xff]  ;;  %v2529_v43 = vld [vmem:[#allocation2 + $0x50] sm:$0xff] }
 0x239   :  { %v1415_v53 = vrot.slane %v1414_v61, 4  ;;  %v1422_v37 = vrot.slane %v1421_v4, 4  ;;  %v1319_v14 = vrot.slane %v1318_v35, 2  ;;  %v1274_v60 = vmul.f32 %v2523_v18, %v1224_v26 }
 0x23a   :  { %v1326_v44 = vrot.slane %v1325_v36, 2  ;;  %v1225_v10 = vmul.f32 %v2478_v50, %v2915_v8  ;;  %v1314_v24 = vrot.slane %v1313_v25, 1  ;;  %v1275_v20 = vmul.f32 %v2524_v59, %v1224_v26  ;;  %v2527_v59 = vld [vmem:[#allocation2 + $0x40] sm:$0xff] }
 0x23b   :  { %v1416_v21 = vadd.f32 %v1415_v53, %v1414_v61  ;;  %v1423_v54 = vadd.f32 %v1422_v37, %v1421_v4  ;;  %1665 = vxpose.xlu0.b32.start [1/2] (short) (narrow) %v1210_v28, 8  ;;  %v1320_v56 = vadd.f32 %v1319_v14, %v1318_v35  ;;  %2493 = vrcp.f32 %v1145_v42 }
 0x23c   :  { %v1327_v1 = vadd.f32 %v1326_v44, %v1325_v36  ;;  %v1276_v27 = vmul.f32 %v2525_v40, %v1225_v10  ;;  %1890 = vxpose.xlu1.b32.end [2/2] (short) (narrow) %v1225_v10, 8  ;;  %v1277_v47 = vmul.f32 %v2526_v7, %v1225_v10  ;;  %v1211_v32 = vmul.f32 %v2480_v38, %v2937_v2  ;;  %v3069_v8 = vpop.eup %2485  ;;  %v2528_v7 = vld [vmem:[#allocation2 + $0x48] sm:$0xff] }
 0x23d   :  { %v1417_v41 = vrot.slane %v1416_v21, 2  ;;  %v3073_v50 = vadd.f32 %v3063_v51, %v3054_v52  ;;  %v1321_v26 = vrot.slane %v1320_v56, 1  ;;  %v1308_v36 = vadd.f32 %v1307_v11, %v1306_v46  ;;  %v2530_v11 = vld [vmem:[#allocation2 + $0x58] sm:$0xff] }
 0x23e   :  { %v1328_v61 = vrot.slane %v1327_v1, 1  ;;  %v1428_v4 = vadd.f32 %v1276_v27, %v1274_v60  ;;  %v3075_v35 = vpop.eup %2487  ;;  %v1315_v42 = vadd.f32 %v1314_v24, %v1313_v25  ;;  %v1424_v53 = vrot.slane %v1423_v54, 2 }
 0x23f   :  { %v1435_v37 = vadd.f32 %v1277_v47, %v1275_v20  ;;  %1666 = vxpose.xlu0.b32.end [2/2] (short) (narrow) %v1211_v32, 8  ;;  %v2490_v14 = vpop.eup %2489  ;;  %v1322_v2 = vadd.f32 %v1321_v26, %v1320_v56  ;;  %v1418_v44 = vadd.f32 %v1417_v41, %v1416_v21  ;;  %v1246_v40 = vmul.f32 %v2527_v59, %v1210_v28 }
 0x240   :  { %v1329_v38 = vadd.f32 %v1328_v61, %v1327_v1  ;;  %v1429_v18 = vrot.slane %v1428_v4, 4  ;;  %v1247_v29 = vmul.f32 %v2528_v7, %v1210_v28  ;;  %v1248_v60 = vmul.f32 %v2529_v43, %v1211_v32 }
 0x241   :  { %v2492_v10 = vpop.eup %2491  ;;  %v1436_v33 = vrot.slane %v1435_v37, 4  ;;  %v3078_v27 = vsel %vm1558_vm0, %v1322_v2, %v1308_v36  ;;  %v1249_v24 = vmul.f32 %v2530_v11, %v1211_v32  ;;  %v3084_v21 = vadd.f32 %v1161_v15, %v3046_v9  ;;  %v2531_v36 = vld [vmem:[#allocation2 + $0x60] sm:$0xff]  ;;  %v2532_v2 = vld [vmem:[#allocation2 + $0x68] sm:$0xff]  ;;  %v2538_v11 = vld [vmem:[#allocation2 + $0x158] sm:$0xff] }
 0x242   :  { %v3081_v46 = vsel %vm1558_vm0, %v1329_v38, %v1315_v42  ;;  %v1430_v25 = vadd.f32 %v1429_v18, %v1428_v4  ;;  %v3088_v20 = vadd.f32 %v3075_v35, %v3069_v8  ;;  %v1425_v28 = vadd.f32 %v1424_v53, %v1423_v54  ;;  %v2533_v53 = vld [vmem:[#allocation2 + $0x140] sm:$0xff] }
 0x243   :  { %v1437_v56 = vadd.f32 %v1436_v33, %v1435_v37  ;;  %v1419_v1 = vrot.slane %v1418_v44, 1  ;;  %v1212_v47 = vmul.f32 %v2490_v14, %v2946_v49  ;;  %v1226_v43 = vmul.f32 %v2492_v10, %v2954_v5  ;;  %v2534_v49 = vld [vmem:[#allocation2 + $0x148] sm:$0xff] }
 0x244   :  { %v1431_v41 = vrot.slane %v1430_v25, 2  ;;  %v1330_v61 = vadd.f32 %v1248_v60, %v1246_v40  ;;  %v1213_v4 = vmul.f32 %v2490_v14, %v2950_v23  ;;  %v1227_v32 = vmul.f32 %v2492_v10, %v2958_v57  ;;  %v2535_v40 = vld [vmem:[#allocation2 + $0x70] sm:$0xff]  ;;  %v2536_v14 = vld [vmem:[#allocation2 + $0x78] sm:$0xff] }
 0x245   :  { %v1438_v26 = vrot.slane %v1437_v56, 2  ;;  %v1337_v15 = vadd.f32 %v1249_v24, %v1247_v29  ;;  %v1250_v42 = vmul.f32 %v2531_v36, %v1212_v47  ;;  %v1251_v38 = vmul.f32 %v2532_v2, %v1212_v47  ;;  %1697 = vxpose.xlu1.b32.start [1/2] (short) (narrow) %v1212_v47, 8  ;;  %1921 = vxpose.xlu0.b32.start [1/2] (short) (narrow) %v1226_v43, 8  ;;  %v2537_v60 = vld [vmem:[#allocation2 + $0x150] sm:$0xff] }
 0x246   :  { %v1432_v9 = vadd.f32 %v1431_v41, %v1430_v25  ;;  %v1426_v33 = vrot.slane %v1425_v28, 1  ;;  %v1278_v37 = vmul.f32 %v2533_v53, %v1226_v43  ;;  %v1279_v18 = vmul.f32 %v2534_v49, %v1226_v43 }
 0x247   :  { %v1439_v54 = vadd.f32 %v1438_v26, %v1437_v56  ;;  %v1420_v5 = vadd.f32 %v1419_v1, %v1418_v44  ;;  %v1252_v23 = vmul.f32 %v2535_v40, %v1213_v4  ;;  %v1253_v57 = vmul.f32 %v2536_v14, %v1213_v4 }
 0x248   :  { %v1433_v59 = vrot.slane %v1432_v9, 1  ;;  %v2494_v10 = vpop.eup %2493  ;;  %v1331_v7 = vrot.slane %v1330_v61, 4  ;;  %v1280_v25 = vmul.f32 %v2537_v60, %v1227_v32  ;;  %v1281_v24 = vmul.f32 %v2538_v11, %v1227_v32 }
 0x249   :  { %v1440_v29 = vrot.slane %v1439_v54, 1  ;;  %v1338_v56 = vrot.slane %v1337_v15, 4  ;;  %v1344_v47 = vadd.f32 %v1252_v23, %v1250_v42  ;;  %v1351_v26 = vadd.f32 %v1253_v57, %v1251_v38  ;;  %1698 = vxpose.xlu1.b32.end [2/2] (short) (narrow) %v1213_v4, 8  ;;  %1922 = vxpose.xlu0.b32.end [2/2] (short) (narrow) %v1227_v32, 8 }
 0x24a   :  { %v1434_v41 = vadd.f32 %v1433_v59, %v1432_v9  ;;  %v1427_v36 = vadd.f32 %v1426_v33, %v1425_v28  ;;  %v1442_v44 = vadd.f32 %v1280_v25, %v1278_v37  ;;  %v1449_v1 = vadd.f32 %v1281_v24, %v1279_v18  ;;  %v2541_v25 = vld [vmem:[#allocation2 + $0x170] sm:$0xff] }
 0x24b   :  { %v1441_v43 = vadd.f32 %v1440_v29, %v1439_v54  ;;  %v1156_v2 = vrot.slane %v3049_v12, 2  ;;  %v1112_v53 = vrot.slane %v3073_v50, 4  ;;  %v1168_v49 = vrot.slane %v3088_v20, 4 }
 0x24c   :  { %v3098_v40 = vsel %vm1558_vm0, %v1434_v41, %v1420_v5  ;;  %v1107_v9 = vrot.slane %v3051_v0, 2  ;;  %v1332_v4 = vadd.f32 %v1331_v7, %v1330_v61  ;;  %v1345_v28 = vrot.slane %v1344_v47, 4  ;;  %v2539_v61 = vld [vmem:[#allocation2 + $0x160] sm:$0xff]  ;;  %v2540_v7 = vld [vmem:[#allocation2 + $0x168] sm:$0xff] }
 0x24d   :  { %v3102_v42 = vsel %vm1558_vm0, %v1441_v43, %v1427_v36  ;;  %v1163_v38 = vrot.slane %v3084_v21, 2  ;;  %v1339_v33 = vadd.f32 %v1338_v56, %v1337_v15  ;;  %v1352_v32 = vrot.slane %v1351_v26, 4 }
 0x24e   :  { %v1228_v54 = vmul.f32 %v2494_v10, %v2963_v45  ;;  %v1443_v37 = vrot.slane %v1442_v44, 4  ;;  %v1450_v18 = vrot.slane %v1449_v1, 4  ;;  %v3243_v59 = vrot.slane %v3059_v17, 1 }
 0x24f   :  { %v1229_v23 = vmul.f32 %v2494_v10, %v2968_v30  ;;  %v1113_v14 = vadd.f32 %v1112_v53, %v3073_v50  ;;  %v3112_v57 = vadd.f32 %v1168_v49, %v3088_v20  ;;  %v1333_v60 = vrot.slane %v1332_v4, 2 }
 0x250   :  { %v1096_v5 = vadd.f32 %v3243_v59, %v3059_v17  ;;  %v1282_v29 = vmul.f32 %v2539_v61, %v1228_v54  ;;  %v1283_v15 = vmul.f32 %v2540_v7, %v1228_v54  ;;  %1953 = vxpose.xlu1.b32.start [1/2] (short) (narrow) %v1228_v54, 8  ;;  %v1346_v45 = vadd.f32 %v1345_v28, %v1344_v47  ;;  %v2542_v17 = vld [vmem:[#allocation2 + $0x178] sm:$0xff] }
 0x251   :  { %v1284_v11 = vmul.f32 %v2541_v25, %v1229_v23  ;;  %v1340_v24 = vrot.slane %v1339_v33, 2  ;;  %v1353_v41 = vadd.f32 %v1352_v32, %v1351_v26  ;;  %v1285_v56 = vmul.f32 %v2542_v17, %v1229_v23 }
 0x252   :  { %2495 = vrcp.f32 %v1096_v5  ;;  %v3244_v30 = vrot.slane %v3026_v6, 2  ;;  %v1444_v20 = vadd.f32 %v1443_v37, %v1442_v44  ;;  %v1451_v10 = vadd.f32 %v1450_v18, %v1449_v1 }
 0x253   :  { %v1456_v36 = vadd.f32 %v1284_v11, %v1282_v29  ;;  %v3245_v43 = vrot.slane %v3017_v34, 2  ;;  %v1114_v49 = vrot.slane %v1113_v14, 2  ;;  %v1170_v47 = vrot.slane %v3112_v57, 2 }
 0x254   :  { %v1101_v50 = vadd.f32 %v3244_v30, %v3026_v6  ;;  %v1463_v28 = vadd.f32 %v1285_v56, %v1283_v15  ;;  %1954 = vxpose.xlu1.b32.end [2/2] (short) (narrow) %v1229_v23, 8  ;;  %v1334_v26 = vadd.f32 %v1333_v60, %v1332_v4  ;;  %v1347_v32 = vrot.slane %v1346_v45, 2 }
 0x255   :  { %v1150_v53 = vadd.f32 %v3245_v43, %v3017_v34  ;;  %v1457_v59 = vrot.slane %v1456_v36, 4  ;;  %v1341_v61 = vadd.f32 %v1340_v24, %v1339_v33  ;;  %v1354_v7 = vrot.slane %v1353_v41, 2 }
 0x256   :  { %v1102_v54 = vrot.slane %v1101_v50, 1  ;;  %v1464_v6 = vrot.slane %v1463_v28, 4  ;;  %v1445_v1 = vrot.slane %v1444_v20, 2  ;;  %v1452_v37 = vrot.slane %v1451_v10, 2 }
 0x257   :  { %v1151_v5 = vrot.slane %v1150_v53, 1  ;;  %v1458_v18 = vadd.f32 %v1457_v59, %v1456_v36  ;;  %v1157_v34 = vadd.f32 %v1156_v2, %v3049_v12  ;;  %v1108_v15 = vadd.f32 %v1107_v9, %v3051_v0 }
 0x258   :  { %v1103_v44 = vadd.f32 %v1102_v54, %v1101_v50  ;;  %v1465_v25 = vadd.f32 %v1464_v6, %v1463_v28  ;;  %v1335_v23 = vrot.slane %v1334_v26, 1  ;;  %v1348_v11 = vadd.f32 %v1347_v32, %v1346_v45  ;;  %v2545_v6 = vld [vmem:[#allocation2 + $0x90] sm:$0xff] }
 0x259   :  { %v1152_v29 = vadd.f32 %v1151_v5, %v1150_v53  ;;  %v1115_v4 = vadd.f32 %v1114_v49, %v1113_v14  ;;  %v1355_v60 = vadd.f32 %v1354_v7, %v1353_v41  ;;  %v1158_v17 = vrot.slane %v1157_v34, 1  ;;  %v2544_v5 = vld [vmem:[#allocation2 + $0x88] sm:$0xff] }
 0x25a   :  { %2497 = vrcp.f32 %v1103_v44  ;;  %v1109_v33 = vrot.slane %v1108_v15, 1  ;;  %v1164_v24 = vadd.f32 %v1163_v38, %v3084_v21  ;;  %v1446_v56 = vadd.f32 %v1445_v1, %v1444_v20  ;;  %v2546_v1 = vld [vmem:[#allocation2 + $0x98] sm:$0xff] }
 0x25b   :  { %2499 = vrcp.f32 %v1152_v29  ;;  %v1453_v30 = vadd.f32 %v1452_v37, %v1451_v10  ;;  %v1459_v50 = vrot.slane %v1458_v18, 2  ;;  %v1466_v36 = vrot.slane %v1465_v25, 2 }
 0x25c   :  { %v1159_v43 = vadd.f32 %v1158_v17, %v1157_v34  ;;  %v1110_v53 = vadd.f32 %v1109_v33, %v1108_v15  ;;  %v1116_v28 = vrot.slane %v1115_v4, 1  ;;  %v1336_v54 = vadd.f32 %v1335_v23, %v1334_v26  ;;  %v2543_v26 = vld [vmem:[#allocation2 + $0x80] sm:$0xff] }
 0x25d   :  { %v1342_v12 = vrot.slane %v1341_v61, 1  ;;  %v1349_v2 = vrot.slane %v1348_v11, 1  ;;  %v1356_v9 = vrot.slane %v1355_v60, 1  ;;  %v1165_v14 = vrot.slane %v1164_v24, 1 }
 0x25e   :  { %2501 = vrcp.f32 %v1159_v43  ;;  %v1171_v45 = vadd.f32 %v1170_v47, %v3112_v57  ;;  %v1447_v41 = vrot.slane %v1446_v56, 1  ;;  %v1454_v20 = vrot.slane %v1453_v30, 1 }
 0x25f   :  { %v2496_v0 = vpop.eup %2495  ;;  %2503 = vrcp.f32 %v1110_v53  ;;  %v1460_v10 = vadd.f32 %v1459_v50, %v1458_v18  ;;  %v1467_v49 = vadd.f32 %v1466_v36, %v1465_v25  ;;  %v1117_v32 = vadd.f32 %v1116_v28, %v1115_v4 }
 0x260   :  { %v1214_v21 = vmul.f32 %v2496_v0, %v2978_v3  ;;  %v1215_v38 = vmul.f32 %v2496_v0, %v2982_v58  ;;  %v1343_v57 = vadd.f32 %v1342_v12, %v1341_v61  ;;  %v1166_v47 = vadd.f32 %v1165_v14, %v1164_v24 }
 0x261   :  { %v1172_v29 = vrot.slane %v1171_v45, 1  ;;  %v1350_v3 = vadd.f32 %v1349_v2, %v1348_v11  ;;  %v1357_v58 = vadd.f32 %v1356_v9, %v1355_v60  ;;  %v3127_v18 = vadd.f32 %v1447_v41, %v1446_v56  ;;  %v2549_v2 = vld [vmem:[#allocation2 + $0xb0] sm:$0xff]  ;;  %v2550_v9 = vld [vmem:[#allocation2 + $0xb8] sm:$0xff] }
 0x262   :  { %v1254_v59 = vmul.f32 %v2543_v26, %v1214_v21  ;;  %v1255_v7 = vmul.f32 %v2544_v5, %v1214_v21  ;;  %1729 = vxpose.xlu0.b32.start [1/2] (short) (narrow) %v1214_v21, 8  ;;  %v1256_v44 = vmul.f32 %v2545_v6, %v1215_v38  ;;  %v1257_v37 = vmul.f32 %v2546_v1, %v1215_v38  ;;  %v2554_v26 = vld [vmem:[#allocation2 + $0x198] sm:$0xff] }
 0x263   :  { %v3129_v25 = vadd.f32 %v1454_v20, %v1453_v30  ;;  %v1461_v23 = vrot.slane %v1460_v10, 1  ;;  %v1561_v4 = vsel %vm1560_vm1, %v1336_v54, %v3078_v27  ;;  %v1468_v33 = vrot.slane %v1467_v49, 1  ;;  %v2547_v27 = vld [vmem:[#allocation2 + $0xa0] sm:$0xff]  ;;  %v2548_v54 = vld [vmem:[#allocation2 + $0xa8] sm:$0xff]  ;;  %v2553_v20 = vld [vmem:[#allocation2 + $0x190] sm:$0xff] }
 0x264   :  { %v1358_v34 = vadd.f32 %v1256_v44, %v1254_v59  ;;  %v1365_v15 = vadd.f32 %v1257_v37, %v1255_v7  ;;  %2505 = vrcp.f32 %v1117_v32  ;;  %v1173_v24 = vadd.f32 %v1172_v29, %v1171_v45  ;;  %v2552_v45 = vld [vmem:[#allocation2 + $0x188] sm:$0xff] }
 0x265   :  { %2507 = vrcp.f32 %v1166_v47  ;;  %v3142_v7 = vadd.f32 %v1468_v33, %v1467_v49  ;;  %v1573_v44 = vsel %vm1560_vm1, %v1343_v57, %v3081_v46 }
 0x266   :  { %v1359_v50 = vrot.slane %v1358_v34, 4  ;;  %v1366_v36 = vrot.slane %v1365_v15, 4  ;;  %1730 = vxpose.xlu0.b32.end [2/2] (short) (narrow) %v1215_v38, 8  ;;  %2509 = vrcp.f32 %v1173_v24  ;;  %v3149_v49 = vsel %vm1562_vm2, %v1357_v58, %v1573_v44 }
 0x267   :  { %v2498_v17 = vpop.eup %2497 }
 0x268   :  { %v2500_v61 = vpop.eup %2499  ;;  %v1216_v11 = vmul.f32 %v2498_v17, %v2997_v19  ;;  %v1217_v60 = vmul.f32 %v2498_v17, %v2999_v48  ;;  %v1360_v56 = vadd.f32 %v1359_v50, %v1358_v34  ;;  %v1367_v30 = vadd.f32 %v1366_v36, %v1365_v15  ;;  %v2551_v48 = vld [vmem:[#allocation2 + $0x180] sm:$0xff] }
 0x269   :  { %v1230_v43 = vmul.f32 %v2500_v61, %v2985_v16  ;;  %v1231_v53 = vmul.f32 %v2500_v61, %v2990_v63  ;;  %v3137_v19 = vadd.f32 %v1461_v23, %v1460_v10  ;;  %v3140_v16 = vsel %vm1562_vm2, %v1350_v3, %v1561_v4  ;;  %v2555_v50 = vld [vmem:[#allocation2 + $0x1a0] sm:$0xff]  ;;  %v2556_v61 = vld [vmem:[#allocation2 + $0x1a8] sm:$0xff] }
 0x26a   :  { %v1258_v28 = vmul.f32 %v2547_v27, %v1216_v11  ;;  %v1259_v12 = vmul.f32 %v2548_v54, %v1216_v11  ;;  %1761 = vxpose.xlu1.b32.start [1/2] (short) (narrow) %v1216_v11, 8  ;;  %v1260_v0 = vmul.f32 %v2549_v2, %v1217_v60  ;;  %v1261_v14 = vmul.f32 %v2550_v9, %v1217_v60  ;;  %v2558_v27 = vld [vmem:[#allocation2 + $0xc8] sm:$0xff] }
 0x26b   :  { %v1286_v41 = vmul.f32 %v2551_v48, %v1230_v43  ;;  %v1287_v21 = vmul.f32 %v2552_v45, %v1230_v43  ;;  %1985 = vxpose.xlu0.b32.start [1/2] (short) (narrow) %v1230_v43, 8  ;;  %v1288_v32 = vmul.f32 %v2553_v20, %v1231_v53  ;;  %v1289_v59 = vmul.f32 %v2554_v26, %v1231_v53  ;;  %v2502_v5 = vpop.eup %2501 }
 0x26c   :  { %v1372_v63 = vadd.f32 %v1260_v0, %v1258_v28  ;;  %v1379_v38 = vadd.f32 %v1261_v14, %v1259_v12  ;;  %v1361_v6 = vrot.slane %v1360_v56, 2  ;;  %v1368_v10 = vrot.slane %v1367_v30, 2  ;;  %v2504_v1 = vpop.eup %2503  ;;  %v2559_v14 = vld [vmem:[#allocation2 + $0x1b0] sm:$0xff] }
 0x26d   :  { %v1470_v29 = vadd.f32 %v1288_v32, %v1286_v41  ;;  %v1477_v3 = vadd.f32 %v1289_v59, %v1287_v21  ;;  %v1232_v34 = vmul.f32 %v2502_v5, %v3003_v55  ;;  %v1218_v15 = vmul.f32 %v2504_v1, %v3013_v31  ;;  %v2557_v31 = vld [vmem:[#allocation2 + $0xc0] sm:$0xff]  ;;  %v2560_v41 = vld [vmem:[#allocation2 + $0x1b8] sm:$0xff]  ;;  %v2561_v21 = vld [vmem:[#allocation2 + $0xd0] sm:$0xff] }
 0x26e   :  { %v1373_v37 = vrot.slane %v1372_v63, 4  ;;  %v1380_v47 = vrot.slane %v1379_v38, 4  ;;  %1762 = vxpose.xlu1.b32.end [2/2] (short) (narrow) %v1217_v60, 8  ;;  %v1362_v46 = vadd.f32 %v1361_v6, %v1360_v56  ;;  %v1369_v57 = vadd.f32 %v1368_v10, %v1367_v30 }
 0x26f   :  { %1986 = vxpose.xlu0.b32.end [2/2] (short) (narrow) %v1231_v53, 8  ;;  %v1471_v17 = vrot.slane %v1470_v29, 4  ;;  %v1478_v33 = vrot.slane %v1477_v3, 4  ;;  %v1290_v36 = vmul.f32 %v2555_v50, %v1232_v34  ;;  %v1291_v11 = vmul.f32 %v2556_v61, %v1232_v34 }
 0x270   :  { %v1374_v23 = vadd.f32 %v1373_v37, %v1372_v63  ;;  %v1381_v4 = vadd.f32 %v1380_v47, %v1379_v38  ;;  %v1262_v24 = vmul.f32 %v2557_v31, %v1218_v15  ;;  %v1263_v58 = vmul.f32 %v2558_v27, %v1218_v15  ;;  %v2562_v38 = vld [vmem:[#allocation2 + $0xd8] sm:$0xff]  ;;  %v2566_v27 = vld [vmem:[#allocation2 + $0x1c8] sm:$0xff] }
 0x271   :  { %v1472_v53 = vadd.f32 %v1471_v17, %v1470_v29  ;;  %v1479_v55 = vadd.f32 %v1478_v33, %v1477_v3  ;;  %v1233_v28 = vmul.f32 %v2502_v5, %v3007_v62  ;;  %v1219_v54 = vmul.f32 %v2504_v1, %v3015_v22  ;;  %v2506_v56 = vpop.eup %2505 }
 0x272   :  { %v1375_v60 = vrot.slane %v1374_v23, 2  ;;  %v1382_v43 = vrot.slane %v1381_v4, 2  ;;  %2017 = vxpose.xlu1.b32.start [1/2] (short) (narrow) %v1232_v34, 8  ;;  %v2508_v9 = vpop.eup %2507  ;;  %v1363_v32 = vrot.slane %v1362_v46, 1  ;;  %v3156_v62 = vsel %vm1560_vm1, %v3127_v18, %v3098_v40 }
 0x273   :  { %1793 = vxpose.xlu0.b32.start [1/2] (short) (narrow) %v1218_v15, 8  ;;  %v1473_v2 = vrot.slane %v1472_v53, 2  ;;  %v1480_v0 = vrot.slane %v1479_v55, 2  ;;  %v1292_v48 = vmul.f32 %v2559_v14, %v1233_v28  ;;  %v1293_v45 = vmul.f32 %v2560_v41, %v1233_v28  ;;  %v2510_v50 = vpop.eup %2509 }
 0x274   :  { %v1376_v30 = vadd.f32 %v1375_v60, %v1374_v23  ;;  %v1383_v12 = vadd.f32 %v1382_v43, %v1381_v4  ;;  %v1264_v63 = vmul.f32 %v2561_v21, %v1219_v54  ;;  %v1265_v20 = vmul.f32 %v2562_v38, %v1219_v54 }
 0x275   :  { %v1474_v26 = vadd.f32 %v1473_v2, %v1472_v53  ;;  %v3161_v22 = vsel %vm1560_vm1, %v3129_v25, %v3102_v42  ;;  %v1484_v59 = vadd.f32 %v1292_v48, %v1290_v36  ;;  %v1491_v5 = vadd.f32 %v1293_v45, %v1291_v11  ;;  %v2563_v53 = vld [vmem:[#allocation2 + $0xe0] sm:$0xff]  ;;  %v2568_v48 = vld [vmem:[#allocation2 + $0xf8] sm:$0xff]  ;;  %v2569_v45 = vld [vmem:[#allocation2 + $0x1d0] sm:$0xff] }
 0x276   :  { %2018 = vxpose.xlu1.b32.end [2/2] (short) (narrow) %v1233_v28, 8  ;;  %v1386_v6 = vadd.f32 %v1264_v63, %v1262_v24  ;;  %v1393_v10 = vadd.f32 %v1265_v20, %v1263_v58  ;;  %v1370_v44 = vrot.slane %v1369_v57, 1  ;;  %v1377_v1 = vrot.slane %v1376_v30, 1  ;;  %v2570_v63 = vld [vmem:[#allocation2 + $0x1d8] sm:$0xff] }
 0x277   :  { %1794 = vxpose.xlu0.b32.end [2/2] (short) (narrow) %v1219_v54, 8  ;;  %v1384_v37 = vrot.slane %v1383_v12, 1  ;;  %v1481_v47 = vadd.f32 %v1480_v0, %v1479_v55  ;;  %v1485_v29 = vrot.slane %v1484_v59, 4  ;;  %v1492_v3 = vrot.slane %v1491_v5, 4  ;;  %v2567_v0 = vld [vmem:[#allocation2 + $0xf0] sm:$0xff] }
 0x278   :  { %v1387_v34 = vrot.slane %v1386_v6, 4  ;;  %v1394_v15 = vrot.slane %v1393_v10, 4  ;;  %v3163_v40 = vadd.f32 %v1363_v32, %v1362_v46  ;;  %v1475_v18 = vrot.slane %v1474_v26, 1 }
 0x279   :  { %v1220_v23 = vmul.f32 %v2506_v56, %v3054_v52  ;;  %v1234_v42 = vmul.f32 %v2508_v9, %v3036_v13  ;;  %v1486_v25 = vadd.f32 %v1485_v29, %v1484_v59  ;;  %v1493_v4 = vadd.f32 %v1492_v3, %v1491_v5  ;;  %v2564_v52 = vld [vmem:[#allocation2 + $0xe8] sm:$0xff]  ;;  %v2565_v13 = vld [vmem:[#allocation2 + $0x1c0] sm:$0xff] }
 0x27a   :  { %v1388_v17 = vadd.f32 %v1387_v34, %v1386_v6  ;;  %v1395_v33 = vadd.f32 %v1394_v15, %v1393_v10  ;;  %v3167_v36 = vadd.f32 %v1370_v44, %v1369_v57  ;;  %v3169_v61 = vadd.f32 %v1377_v1, %v1376_v30  ;;  %v2571_v6 = vld [vmem:[#allocation2 + $0x1e0] sm:$0xff]  ;;  %v2572_v44 = vld [vmem:[#allocation2 + $0x1e8] sm:$0xff]  ;;  %v2573_v15 = vld [vmem:[#allocation2 + $0x1f0] sm:$0xff] }
 0x27b   :  { %v3171_v11 = vadd.f32 %v1384_v37, %v1383_v12  ;;  %v1482_v60 = vrot.slane %v1481_v47, 1  ;;  %1825 = vxpose.xlu1.b32.start [1/2] (short) (narrow) %v1220_v23, 8  ;;  %v1487_v46 = vrot.slane %v1486_v25, 2  ;;  %v1494_v43 = vrot.slane %v1493_v4, 2  ;;  %2049 = vxpose.xlu0.b32.start [1/2] (short) (narrow) %v1234_v42, 8 }
 0x27c   :  { %v1266_v55 = vmul.f32 %v2563_v53, %v1220_v23  ;;  %v1267_v31 = vmul.f32 %v2564_v52, %v1220_v23  ;;  %v1294_v24 = vmul.f32 %v2565_v13, %v1234_v42  ;;  %v1295_v58 = vmul.f32 %v2566_v27, %v1234_v42  ;;  %v2574_v23 = vld [vmem:[#allocation2 + $0x1f8] sm:$0xff] }
 0x27d   :  { %v1221_v57 = vmul.f32 %v2506_v56, %v3063_v51  ;;  %v1235_v28 = vmul.f32 %v2508_v9, %v3039_v39  ;;  %v3175_v54 = vadd.f32 %v1475_v18, %v1474_v26  ;;  %v1389_v30 = vrot.slane %v1388_v17, 2 }
 0x27e   :  { %v1396_v12 = vrot.slane %v1395_v33, 2  ;;  %v1236_v2 = vmul.f32 %v2510_v50, %v3069_v8  ;;  %v3178_v20 = vadd.f32 %v1482_v60, %v1481_v47  ;;  %v1488_v51 = vadd.f32 %v1487_v46, %v1486_v25 }
 0x27f   :  { %v1268_v14 = vmul.f32 %v2567_v0, %v1221_v57  ;;  %v1269_v41 = vmul.f32 %v2568_v48, %v1221_v57  ;;  %1826 = vxpose.xlu1.b32.end [2/2] (short) (narrow) %v1221_v57, 8  ;;  %v1296_v21 = vmul.f32 %v2569_v45, %v1235_v28  ;;  %v1297_v38 = vmul.f32 %v2570_v63, %v1235_v28 }
 0x280   :  { %v1495_v56 = vadd.f32 %v1494_v43, %v1493_v4  ;;  %2050 = vxpose.xlu0.b32.end [2/2] (short) (narrow) %v1235_v28, 8  ;;  %v1237_v39 = vmul.f32 %v2510_v50, %v3075_v35  ;;  %v1390_v59 = vadd.f32 %v1389_v30, %v1388_v17  ;;  %v1397_v5 = vadd.f32 %v1396_v12, %v1395_v33 }
 0x281   :  { %v1400_v9 = vadd.f32 %v1268_v14, %v1266_v55  ;;  %v1407_v32 = vadd.f32 %v1269_v41, %v1267_v31  ;;  %v1498_v26 = vadd.f32 %v1296_v21, %v1294_v24  ;;  %v1505_v8 = vadd.f32 %v1297_v38, %v1295_v58 }
 0x282   :  { %v1298_v10 = vmul.f32 %v2571_v6, %v1236_v2  ;;  %v1299_v1 = vmul.f32 %v2572_v44, %v1236_v2  ;;  %v1489_v34 = vrot.slane %v1488_v51, 1  ;;  %v1496_v35 = vrot.slane %v1495_v56, 1 }
 0x283   :  { %v1401_v37 = vrot.slane %v1400_v9, 4  ;;  %v1408_v47 = vrot.slane %v1407_v32, 4  ;;  %v1499_v29 = vrot.slane %v1498_v26, 4  ;;  %v1506_v3 = vrot.slane %v1505_v8, 4  ;;  %2081 = vxpose.xlu1.b32.start [1/2] (short) (narrow) %v1236_v2, 8 }
 0x284   :  { %v1300_v18 = vmul.f32 %v2573_v15, %v1237_v39  ;;  %v1301_v42 = vmul.f32 %v2574_v23, %v1237_v39  ;;  %v1391_v50 = vrot.slane %v1390_v59, 1  ;;  %v1398_v60 = vrot.slane %v1397_v5, 1 }
 0x285   :  { %v1402_v25 = vadd.f32 %v1401_v37, %v1400_v9  ;;  %v1409_v4 = vadd.f32 %v1408_v47, %v1407_v32  ;;  %v1500_v17 = vadd.f32 %v1499_v29, %v1498_v26  ;;  %v1507_v33 = vadd.f32 %v1506_v3, %v1505_v8 }
 0x286   :  { %v1512_v46 = vadd.f32 %v1300_v18, %v1298_v10  ;;  %v1519_v43 = vadd.f32 %v1301_v42, %v1299_v1  ;;  %v1490_v13 = vadd.f32 %v1489_v34, %v1488_v51  ;;  %v1497_v24 = vadd.f32 %v1496_v35, %v1495_v56 }
 0x287   :  { %v1403_v53 = vrot.slane %v1402_v25, 2  ;;  %v1410_v55 = vrot.slane %v1409_v4, 2  ;;  %v1501_v52 = vrot.slane %v1500_v17, 2  ;;  %v1508_v31 = vrot.slane %v1507_v33, 2  ;;  %2082 = vxpose.xlu1.b32.end [2/2] (short) (narrow) %v1237_v39, 8 }
 0x288   :  { %v1513_v27 = vrot.slane %v1512_v46, 4  ;;  %v1520_v58 = vrot.slane %v1519_v43, 4  ;;  %v1392_v14 = vadd.f32 %v1391_v50, %v1390_v59  ;;  %v1399_v48 = vadd.f32 %v1398_v60, %v1397_v5 }
 0x289   :  { %v1404_v57 = vadd.f32 %v1403_v53, %v1402_v25  ;;  %v1411_v28 = vadd.f32 %v1410_v55, %v1409_v4  ;;  %v1502_v30 = vadd.f32 %v1501_v52, %v1500_v17  ;;  %v1509_v12 = vadd.f32 %v1508_v31, %v1507_v33 }
 0x28a   :  { %v1514_v2 = vadd.f32 %v1513_v27, %v1512_v46  ;;  %v1521_v0 = vadd.f32 %v1520_v58, %v1519_v43  ;;  %v1565_v51 = vsel %vm1564_vm3, %v3163_v40, %v3140_v16  ;;  %v1575_v56 = vsel %vm1564_vm3, %v3167_v36, %v3149_v49 }
 0x28b   :  { %v1503_v41 = vrot.slane %v1502_v30, 1  ;;  %v1510_v45 = vrot.slane %v1509_v12, 1  ;;  %v1405_v21 = vrot.slane %v1404_v57, 1  ;;  %v1412_v63 = vrot.slane %v1411_v28, 1 }
 0x28c   :  { %v1515_v38 = vrot.slane %v1514_v2, 2  ;;  %v1522_v9 = vrot.slane %v1521_v0, 2  ;;  %v1567_v26 = vsel %vm1566_vm4, %v3169_v61, %v1565_v51  ;;  %v1576_v8 = vsel %vm1566_vm4, %v3171_v11, %v1575_v56 }
 0x28d   :  { %v1406_v39 = vadd.f32 %v1405_v21, %v1404_v57  ;;  %v1413_v32 = vadd.f32 %v1412_v63, %v1411_v28  ;;  %v1569_v6 = vsel %vm1568_vm5, %v1392_v14, %v1567_v26  ;;  %v1577_v10 = vsel %vm1568_vm5, %v1399_v48, %v1576_v8 }
 0x28e   :  { %v1516_v59 = vadd.f32 %v1515_v38, %v1514_v2  ;;  %v1523_v5 = vadd.f32 %v1522_v9, %v1521_v0  ;;  %v1504_v44 = vadd.f32 %v1503_v41, %v1502_v30  ;;  %v1511_v16 = vadd.f32 %v1510_v45, %v1509_v12 }
 0x28f   :  { %v1571_v40 = vsel %vm1570_vm6, %v1406_v39, %v1569_v6  ;;  %v1578_v49 = vsel %vm1570_vm6, %v1413_v32, %v1577_v10  ;;  %v1581_v61 = vsel %vm1562_vm2, %v3137_v19, %v3156_v62  ;;  %v1588_v11 = vsel %vm1562_vm2, %v3142_v7, %v3161_v22 }
 0x290   :  { %v1517_v36 = vrot.slane %v1516_v59, 1  ;;  %v1524_v1 = vrot.slane %v1523_v5, 1  ;;  %1597 = vst [vmem:[#allocation7] sm:$0xff] %v1571_v40  ;;  %1598 = vst [vmem:[#allocation7 + $0x8] sm:$0xff] %v1578_v49  ;;  %v1582_v37 = vsel %vm1564_vm3, %v3175_v54, %v1581_v61  ;;  %v1589_v47 = vsel %vm1564_vm3, %v3178_v20, %v1588_v11 }
 0x291   :  { %v1583_v34 = vsel %vm1566_vm4, %v1490_v13, %v1582_v37  ;;  %v1590_v19 = vsel %vm1566_vm4, %v1497_v24, %v1589_v47 }
 0x292   :  { %v1518_v29 = vadd.f32 %v1517_v36, %v1516_v59  ;;  %v1525_v3 = vadd.f32 %v1524_v1, %v1523_v5  ;;  %v1584_v62 = vsel %vm1568_vm5, %v1504_v44, %v1583_v34  ;;  %v1591_v7 = vsel %vm1568_vm5, %v1511_v16, %v1590_v19 }
 0x294   :  { %v1585_v22 = vsel %vm1570_vm6, %v1518_v29, %v1584_v62  ;;  %v1592_v35 = vsel %vm1570_vm6, %v1525_v3, %v1591_v7 }
 0x295   :  { %1599 = vst [vmem:[#allocation7 + $0x10] sm:$0xff] %v1585_v22  ;;  %1600 = vst [vmem:[#allocation7 + $0x18] sm:$0xff] %v1592_v35 }
 0x296   :  { %2626 = shalt.err (!%p2623_p0)
}
 0x297   :  { %2141 = dma.vmem_to_hbm [thread:$0]  %s2136_s29, 512, %s3241_s3, [#allocation4], %s2664_s18, %s2664_s18, %s2665_s19   ;;  %vm2113_vm7 = vcmask 122880  }
 0x298   :  { %s2670_s3 = smov [#allocation8]  }
 0x299   :  { %s2147_s7 = sshll.u32 %s2670_s3, 4  ;;  %s2148_s7 = int_to_ptr.vmem [resolvable:$true] %s2147_s7 }
 0x29a   :  { %s2635_s8 = scalar_lea.vmem %s2148_s7, 256  ;;  %p2640_p2 = scmp.lt.s32.totalorder %s2148_s7, %s2148_s7 }
 0x29b   :  { %p2636_p1 = scmp.ne.s32.totalorder %s2148_s7, %s2635_s8  ;;  %p2641_p3 = scmp.lt.s32.totalorder %s2635_s8, %s2635_s8 }
 0x29d   :  { %p2642_p4 = por %p2641_p3, %p2640_p2 }
 0x29f   :  { %p2643_p5 = pnand %p2642_p4, %p2636_p1 }
 0x2a6   :  { %v1617_v54 = vpop.trf.xlu0 }
 0x2a7   :  { %2114 = vst.msk [vmem:[#allocation8] sm:$0x1] %vm2113_vm7, %v1617_v54 }
 0x2ac   :  { %v1649_v20 = vpop.trf.xlu1 }
 0x2ad   :  { %2115 = vst.msk [vmem:[#allocation8 + $0x1] sm:$0x1] %vm2113_vm7, %v1649_v20 }
 0x2af   :  { %v1873_v15 = vpop.trf.xlu0 }
 0x2b0   :  { %2122 = vst.msk [vmem:[#allocation8 + $0x8] sm:$0x1] %vm2113_vm7, %v1873_v15 }
 0x2b4   :  { %v1905_v18 = vpop.trf.xlu1 }
 0x2b5   :  { %2123 = vst.msk [vmem:[#allocation8 + $0x9] sm:$0x1] %vm2113_vm7, %v1905_v18 }
 0x2b7   :  { %v1681_v23 = vpop.trf.xlu0 }
 0x2b8   :  { %2116 = vst.msk [vmem:[#allocation8 + $0x2] sm:$0x1] %vm2113_vm7, %v1681_v23 }
 0x2c1   :  { %v1713_v42 = vpop.trf.xlu1  ;;  %v1937_v25 = vpop.trf.xlu0 }
 0x2c2   :  { %2117 = vst.msk [vmem:[#allocation8 + $0x3] sm:$0x1] %vm2113_vm7, %v1713_v42  ;;  %2124 = vst.msk [vmem:[#allocation8 + $0xa] sm:$0x1] %vm2113_vm7, %v1937_v25 }
 0x2cc   :  { %v1969_v4 = vpop.trf.xlu1 }
 0x2cd   :  { %2125 = vst.msk [vmem:[#allocation8 + $0xb] sm:$0x1] %vm2113_vm7, %v1969_v4 }
 0x2de   :  { %v1745_v17 = vpop.trf.xlu0 }
 0x2df   :  { %2118 = vst.msk [vmem:[#allocation8 + $0x4] sm:$0x1] %vm2113_vm7, %v1745_v17 }
 0x2e6   :  { %v1777_v33 = vpop.trf.xlu1 }
 0x2e7   :  { %2119 = vst.msk [vmem:[#allocation8 + $0x5] sm:$0x1] %vm2113_vm7, %v1777_v33  ;;  %v2001_v50 = vpop.trf.xlu0 }
 0x2e8   :  { %2126 = vst.msk [vmem:[#allocation8 + $0xc] sm:$0x1] %vm2113_vm7, %v2001_v50 }
 0x2ee   :  { %v2033_v60 = vpop.trf.xlu1 }
 0x2ef   :  { %2127 = vst.msk [vmem:[#allocation8 + $0xd] sm:$0x1] %vm2113_vm7, %v2033_v60  ;;  %v1809_v46 = vpop.trf.xlu0 }
 0x2f0   :  { %2120 = vst.msk [vmem:[#allocation8 + $0x6] sm:$0x1] %vm2113_vm7, %v1809_v46 }
 0x2f7   :  { %v1841_v43 = vpop.trf.xlu1 }
 0x2f8   :  { %2121 = vst.msk [vmem:[#allocation8 + $0x7] sm:$0x1] %vm2113_vm7, %v1841_v43  ;;  %v2065_v53 = vpop.trf.xlu0 }
 0x2f9   :  { %2128 = vst.msk [vmem:[#allocation8 + $0xe] sm:$0x1] %vm2113_vm7, %v2065_v53 }
 0x2ff   :  { %v2097_v55 = vpop.trf.xlu1 }
 0x300   :  { %2129 = vst.msk [vmem:[#allocation8 + $0xf] sm:$0x1] %vm2113_vm7, %v2097_v55 }
 0x301   :  { %2646 = shalt.err (!%p2643_p5)
}
 0x302   :  { %s2671_s9 = smov 1  }
 0x303   :  { %2153 = dma.vmem_to_hbm [thread:$0]  %s2148_s7, 256, %s3242_s4, [#allocation9], %s2665_s19, %s2665_s19, %s2671_s9  }
 0x304   :  { %2659 = dma.done.wait [#allocation4], 512  }
 0x305   :  { %2660 = vsyncadd [#allocation4], 4294966784 }
 0x306   :  { %2661 = dma.done.wait [#allocation9], 256  }
 0x307   :  { %2662 = vsyncadd [#allocation9], 4294967040 }
 0x308   :  { %2160 = vsyncpa [#allocation3], 1 }
 0x309   :  { %2161 = vsyncpa [#allocation6], 1 }
 0x30a   :  { %2162 = vsyncpa [#allocation4], 1 }
 0x30b   :  { %2163 = vsyncpa [#allocation9], 1 }

</bundles_post_ra>
